<compile_context>
chip_gen: v5e
topology: v5e:2x2
jax: 0.10.0
libtpu: 0.0.40
codegen_flags: <defaults>
</compile_context>

<pallas_src>
import functools

import numpy as np
import jax
import jax.numpy as jnp
from jax import lax
from jax.experimental import pallas as pl
from jax.experimental.pallas import tpu as pltpu

EPS = 1e-05
NEG_BIG = -3.0e38
POS_BIG = 3.0e38

# ---------------- configuration (mirrors PNA.__init__ arguments) -------------
HIDDEN_DIM = 32
TARGET_DIM = 8
AGGREGATORS = ("mean", "max", "sum")
SCALERS = ("identity", "amplification", "attenuation")
READOUT_AGGREGATORS = ("mean", "sum", "max", "min")
PROPAGATION_DEPTH = 2
PRETRANS_LAYERS = 1
POSTTRANS_LAYERS = 2
READOUT_LAYERS = 2
AVG_D_LOG = 1.0           # avg_d = {'log': 1.0}
NUM_ATOM_FEATS, ATOM_VOCAB = 2, 10
NUM_BOND_FEATS, BOND_VOCAB = 2, 5


# ---------------- the single fused Pallas kernel ------------------------------
def _pna_fused_kernel(
    # int index inputs
    x_int_ref, e_int_ref, row_e_ref, col_e_ref, col_n_ref, batch_n_ref,
    col_s_ref, batch_s_ref,                       # SMEM copies for scalar reads
    # embedding tables
    atom_tab_ref, bond_tab_ref,
    # stacked per-layer weights
    pre_w_ref, pre_b_ref, post_w1_ref, post_b1_ref, post_w2_ref, post_b2_ref,
    # output MLP
    out_w1_ref, out_b1_ref, out_w2_ref, out_b2_ref,
    # outputs
    node_out_ref, final_out_ref,
    # scratch
    msg_scratch,
    *, n_nodes, n_edges, n_graphs, hidden, n_layers, avg_d_log,
):
    N, E, G, H = n_nodes, n_edges, n_graphs, hidden
    f32 = jnp.float32

    def mm(a, b):
        return jnp.dot(a, b, preferred_element_type=f32)

    # ---- Atom / Bond encoders: sum of embedding lookups via one-hot matmuls ----
    h = jnp.zeros((N, H), f32)
    for i in range(NUM_ATOM_FEATS):
        oh = (x_int_ref[:, i:i + 1] ==
              lax.broadcasted_iota(jnp.int32, (N, ATOM_VOCAB), 1)).astype(f32)
        h = h + mm(oh, atom_tab_ref[i])
    e_feat = jnp.zeros((E, H), f32)
    for i in range(NUM_BOND_FEATS):
        oh = (e_int_ref[:, i:i + 1] ==
              lax.broadcasted_iota(jnp.int32, (E, BOND_VOCAB), 1)).astype(f32)
        e_feat = e_feat + mm(oh, bond_tab_ref[i])

    # ---- graph-structure one-hots, built in-kernel (no HBM mask traffic) ------
    oh_row = (row_e_ref[...] ==
              lax.broadcasted_iota(jnp.int32, (E, N), 1)).astype(f32)   # [E,N]
    oh_col = (col_e_ref[...] ==
              lax.broadcasted_iota(jnp.int32, (E, N), 1)).astype(f32)   # [E,N]
    mask_ne = (lax.broadcasted_iota(jnp.int32, (N, E), 0) ==
               col_n_ref[...]).astype(f32)                              # [N,E]
    deg = jnp.sum(mask_ne, axis=1, keepdims=True)                       # [N,1]
    log_d = jnp.log(deg + 1.0)
    f_amp = log_d * (1.0 / max(avg_d_log, 1e-08))
    f_att = avg_d_log / jnp.maximum(log_d, 1e-08)
    node_iota = lax.broadcasted_iota(jnp.int32, (N, 1), 0)

    # ---- propagation layers (static unroll; everything stays in VMEM) ---------
    for d in range(n_layers):
        h_in = h

        # pretrans: msg = [x[row] | x[col] | e] @ Wp + bp, segment-decomposed
        x_row = mm(oh_row, h)                       # gather x[row] on the MXU
        x_col = mm(oh_col, h)                       # gather x[col] on the MXU
        wp = pre_w_ref[d]                           # [3H, H]
        msg = (mm(x_row, wp[0:H, :]) + mm(x_col, wp[H:2 * H, :]) +
               mm(e_feat, wp[2 * H:3 * H, :]) + pre_b_ref[d])            # [E,H]
        msg_scratch[...] = msg

        # aggregation: scatter-sum / mean via incidence matmul
        agg_sum = mm(mask_ne, msg)                                       # [N,H]
        agg_mean = agg_sum / jnp.maximum(deg, 1.0)

        # scatter-max via running [N,H] accumulator (no [N,E,H] broadcast)
        def emax_body(e_idx, acc):
            n_idx = col_s_ref[0, e_idx]                  # scalar read from SMEM
            m_row = msg_scratch[pl.ds(e_idx, 1), :]      # [1,H]
            return jnp.where(node_iota == n_idx, jnp.maximum(acc, m_row), acc)
        run_max = lax.fori_loop(0, E, emax_body, jnp.full((N, H), NEG_BIG, f32))
        agg_max = jnp.where(deg > 0.0, run_max, 0.0)     # empty neighbourhood -> 0

        # order matches reference: cat([mean, max, sum])
        h_agg = jnp.concatenate([agg_mean, agg_max, agg_sum], axis=-1)   # [N,3H]

        # posttrans layer 1: decomposed over (identity|amp|att|h_in) segments,
        # so the 10H-wide concat is never materialized or stored.
        w1 = post_w1_ref[d]                                              # [10H,H]
        y1 = (mm(h_agg, w1[0:3 * H, :])
              + f_amp * mm(h_agg, w1[3 * H:6 * H, :])
              + f_att * mm(h_agg, w1[6 * H:9 * H, :])
              + mm(h_in, w1[9 * H:10 * H, :])
              + post_b1_ref[d])
        z1 = jnp.maximum(y1, 0.0)                                        # relu
        # posttrans layer 2 (no activation) + residual
        h = mm(z1, post_w2_ref[d]) + post_b2_ref[d] + h_in

    node_out_ref[...] = h

    # ---- graph readout pooling -------------------------------------------------
    oh_g = (lax.broadcasted_iota(jnp.int32, (G, N), 0) ==
            batch_n_ref[...]).astype(f32)                                # [G,N]
    cnt = jnp.sum(oh_g, axis=1, keepdims=True)                           # [G,1]
    r_sum = mm(oh_g, h)
    r_mean = r_sum / jnp.maximum(cnt, 1.0)
    graph_iota = lax.broadcasted_iota(jnp.int32, (G, 1), 0)

    def pool_body(n_idx, carry):
        mx, mn = carry
        g_idx = batch_s_ref[0, n_idx]                    # scalar read from SMEM
        x_row = node_out_ref[pl.ds(n_idx, 1), :]         # [1,H]
        sel = graph_iota == g_idx
        return (jnp.where(sel, jnp.maximum(mx, x_row), mx),
                jnp.where(sel, jnp.minimum(mn, x_row), mn))
    r_max, r_min = lax.fori_loop(
        0, N, pool_body,
        (jnp.full((G, H), NEG_BIG, f32), jnp.full((G, H), POS_BIG, f32)))
    r_max = jnp.where(cnt > 0.0, r_max, 0.0)             # empty graph -> 0
    r_min = jnp.where(cnt > 0.0, r_min, 0.0)

    readout = jnp.concatenate([r_mean, r_sum, r_max, r_min], axis=-1)    # [G,4H]
    readout = jnp.where(jnp.isnan(readout) | jnp.isinf(readout), 0.0, readout)

    # ---- output MLP (relu -> linear) -------------------------------------------
    z = jnp.maximum(mm(readout, out_w1_ref[...]) + out_b1_ref[...], 0.0)
    final = mm(z, out_w2_ref[...]) + out_b2_ref[...]
    final = jnp.where(jnp.isnan(final) | jnp.isinf(final), 0.0, final)
    final_out_ref[...] = final


# ---------------- parameter init (deterministic, in-script) ------------------
def _init_linear(key, fan_in, fan_out):
    w = jax.random.normal(key, (fan_in, fan_out), jnp.float32) / np.sqrt(fan_in)
    b = jnp.zeros((1, fan_out), jnp.float32)
    return w, b


def init_params(key):
    H, T, L = HIDDEN_DIM, TARGET_DIM, PROPAGATION_DEPTH
    keys = jax.random.split(key, 3 + L)
    atom_tab = jnp.stack([jax.random.normal(k, (ATOM_VOCAB, H), jnp.float32) * 0.1
                          for k in jax.random.split(keys[0], NUM_ATOM_FEATS)])
    bond_tab = jnp.stack([jax.random.normal(k, (BOND_VOCAB, H), jnp.float32) * 0.1
                          for k in jax.random.split(keys[1], NUM_BOND_FEATS)])
    n_seg = len(AGGREGATORS) * len(SCALERS) + 1
    pre_w, pre_b, post_w1, post_b1, post_w2, post_b2 = ([] for _ in range(6))
    for d in range(L):
        k_pre, k_p1, k_p2 = jax.random.split(keys[2 + d], 3)
        w, b = _init_linear(k_pre, 3 * H, H);       pre_w.append(w);   pre_b.append(b)
        w, b = _init_linear(k_p1, n_seg * H, H);    post_w1.append(w); post_b1.append(b)
        w, b = _init_linear(k_p2, H, H);            post_w2.append(w); post_b2.append(b)
    k_o1, k_o2 = jax.random.split(keys[2 + L])
    out_w1, out_b1 = _init_linear(k_o1, len(READOUT_AGGREGATORS) * H, H)
    out_w2, out_b2 = _init_linear(k_o2, H, T)
    return {
        "atom_tab": atom_tab, "bond_tab": bond_tab,
        "pre_w": jnp.stack(pre_w), "pre_b": jnp.stack(pre_b),
        "post_w1": jnp.stack(post_w1), "post_b1": jnp.stack(post_b1),
        "post_w2": jnp.stack(post_w2), "post_b2": jnp.stack(post_b2),
        "out_w1": out_w1, "out_b1": out_b1, "out_w2": out_w2, "out_b2": out_b2,
    }


# ---------------- forward builder (single fused pallas_call) ------------------
def build_forward(params, row, col, num_nodes, num_graphs):
    # kernel is specialized on this aggregator/scaler configuration
    assert AGGREGATORS == ("mean", "max", "sum")
    assert SCALERS == ("identity", "amplification", "attenuation")
    assert READOUT_AGGREGATORS == ("mean", "sum", "max", "min")
    assert PRETRANS_LAYERS == 1 and POSTTRANS_LAYERS == 2 and READOUT_LAYERS == 2

    row = np.asarray(row, np.int32)
    col = np.asarray(col, np.int32)
    N, G, H, T, L = num_nodes, num_graphs, HIDDEN_DIM, TARGET_DIM, PROPAGATION_DEPTH
    E = row.shape[0]

    row_e = jnp.asarray(row.reshape(E, 1))
    col_e = jnp.asarray(col.reshape(E, 1))
    col_n = jnp.asarray(col.reshape(1, E))

    kernel = functools.partial(
        _pna_fused_kernel, n_nodes=N, n_edges=E, n_graphs=G,
        hidden=H, n_layers=L, avg_d_log=AVG_D_LOG)

    def vmem():
        return pl.BlockSpec(memory_space=pltpu.MemorySpace.VMEM)

    def smem():
        return pl.BlockSpec(memory_space=pltpu.MemorySpace.SMEM)

    fused = pl.pallas_call(
        kernel,
        in_specs=[vmem()] * 6 + [smem()] * 2 + [vmem()] * 12,
        out_specs=(vmem(), vmem()),
        out_shape=(jax.ShapeDtypeStruct((N, H), jnp.float32),
                   jax.ShapeDtypeStruct((G, T), jnp.float32)),
        scratch_shapes=[pltpu.VMEM((E, H), jnp.float32)],
        compiler_params=pltpu.CompilerParams(vmem_limit_bytes=32 * 1024 * 1024),
    )

    def forward(x_int, edge_attr_int, batch):
        batch_n = jnp.asarray(batch, jnp.int32).reshape(1, N)
        node_features, final = fused(
            x_int.astype(jnp.int32), edge_attr_int.astype(jnp.int32),
            row_e, col_e, col_n, batch_n,
            col_n, batch_n,                                   # SMEM copies
            params["atom_tab"], params["bond_tab"],
            params["pre_w"], params["pre_b"],
            params["post_w1"], params["post_b1"],
            params["post_w2"], params["post_b2"],
            params["out_w1"], params["out_b1"],
            params["out_w2"], params["out_b2"])
        return node_features, final

    return jax.jit(forward)


# ---------------- main --------------------------------------------------------
if __name__ == "__main__":
    key = jax.random.PRNGKey(0)
    k_param, k_x, k_e = jax.random.split(key, 3)

    num_graphs = 2
    nodes_per_graph = 8
    N = num_graphs * nodes_per_graph

    # Bidirectional ring inside each graph -> every node has in-degree 2.
    rows, cols = [], []
    for g in range(num_graphs):
        base = g * nodes_per_graph
        for i in range(nodes_per_graph):
            a, b = base + i, base + (i + 1) % nodes_per_graph
            rows += [a, b]
            cols += [b, a]
    row = np.array(rows, np.int32)
    col = np.array(cols, np.int32)
    E = row.shape[0]

    x_int = jax.random.randint(k_x, (N, NUM_ATOM_FEATS), 0, ATOM_VOCAB, jnp.int32)
    edge_attr_int = jax.random.randint(k_e, (E, NUM_BOND_FEATS), 0, BOND_VOCAB, jnp.int32)
    batch = jnp.repeat(jnp.arange(num_graphs, dtype=jnp.int32), nodes_per_graph)

    params = init_params(k_param)
    fwd = build_forward(params, row, col, N, num_graphs)

    node_features, final_output = fwd(x_int, edge_attr_int, batch)
    jax.block_until_ready((node_features, final_output))

    assert node_features.shape == (N, HIDDEN_DIM)
    assert final_output.shape == (num_graphs, TARGET_DIM)
    assert jnp.all(jnp.isfinite(node_features)) and jnp.all(jnp.isfinite(final_output))
    print("KERNEL_OK")
</pallas_src>

<mosaic_0001>
module attributes {stable_mosaic.version = 11 : i64} {
  func.func @_pna_fused_kernel(%arg0: memref<16x2xi32, #tpu.memory_space<vmem>>, %arg1: memref<32x2xi32, #tpu.memory_space<vmem>>, %arg2: memref<32x1xi32, #tpu.memory_space<vmem>>, %arg3: memref<32x1xi32, #tpu.memory_space<vmem>>, %arg4: memref<1x32xi32, #tpu.memory_space<vmem>>, %arg5: memref<1x16xi32, #tpu.memory_space<vmem>>, %arg6: memref<1x32xi32, #tpu.memory_space<smem>>, %arg7: memref<1x16xi32, #tpu.memory_space<smem>>, %arg8: memref<2x10x32xf32, #tpu.memory_space<vmem>>, %arg9: memref<2x5x32xf32, #tpu.memory_space<vmem>>, %arg10: memref<2x96x32xf32, #tpu.memory_space<vmem>>, %arg11: memref<2x1x32xf32, #tpu.memory_space<vmem>>, %arg12: memref<2x320x32xf32, #tpu.memory_space<vmem>>, %arg13: memref<2x1x32xf32, #tpu.memory_space<vmem>>, %arg14: memref<2x32x32xf32, #tpu.memory_space<vmem>>, %arg15: memref<2x1x32xf32, #tpu.memory_space<vmem>>, %arg16: memref<128x32xf32, #tpu.memory_space<vmem>>, %arg17: memref<1x32xf32, #tpu.memory_space<vmem>>, %arg18: memref<32x8xf32, #tpu.memory_space<vmem>>, %arg19: memref<1x8xf32, #tpu.memory_space<vmem>>, %arg20: memref<16x32xf32, #tpu.memory_space<vmem>>, %arg21: memref<2x8xf32, #tpu.memory_space<vmem>>, %arg22: memref<32x32xf32, #tpu.memory_space<vmem>>) attributes {dimension_semantics = [], scalar_prefetch = 0 : i64, scratch_operands = 1 : i64, tpu.core_type = #tpu.core_type<tc>} {
    %cst = arith.constant 0.000000e+00 : f32
    %0 = vector.broadcast %cst : f32 to vector<16x32xf32>
    %c0 = arith.constant 0 : index
    %c0_0 = arith.constant 0 : index
    %1 = vector.load %arg0[%c0, %c0_0] : memref<16x2xi32, #tpu.memory_space<vmem>>, vector<16x1xi32>
    %2 = tpu.iota {dimensions = array<i32: 1>} : vector<16x10xi32>
    %3 = vector.broadcast %1 : vector<16x1xi32> to vector<16x10xi32>
    %4 = arith.cmpi eq, %3, %2 : vector<16x10xi32>
    %5 = arith.extui %4 : vector<16x10xi1> to vector<16x10xi32>
    %6 = arith.sitofp %5 : vector<16x10xi32> to vector<16x10xf32>
    %c0_1 = arith.constant 0 : index
    %c0_2 = arith.constant 0 : index
    %c0_3 = arith.constant 0 : index
    %7 = vector.load %arg8[%c0_1, %c0_2, %c0_3] : memref<2x10x32xf32, #tpu.memory_space<vmem>>, vector<1x10x32xf32>
    %8 = vector.shape_cast %7 : vector<1x10x32xf32> to vector<10x32xf32>
    %cst_4 = arith.constant dense<0.000000e+00> : vector<16x32xf32>
    %9 = tpu.matmul %6, %8, %cst_4 {dimension_numbers = #tpu.dot_dimension_numbers<[1], [0], [0], [1], [0, 0, 1, 1], [], []>} : vector<16x10xf32>, vector<10x32xf32>, vector<16x32xf32> -> vector<16x32xf32>
    %10 = arith.addf %0, %9 : vector<16x32xf32>
    %c0_5 = arith.constant 0 : index
    %c1 = arith.constant 1 : index
    %11 = vector.load %arg0[%c0_5, %c1] : memref<16x2xi32, #tpu.memory_space<vmem>>, vector<16x1xi32>
    %12 = tpu.iota {dimensions = array<i32: 1>} : vector<16x10xi32>
    %13 = vector.broadcast %11 : vector<16x1xi32> to vector<16x10xi32>
    %14 = arith.cmpi eq, %13, %12 : vector<16x10xi32>
    %15 = arith.extui %14 : vector<16x10xi1> to vector<16x10xi32>
    %16 = arith.sitofp %15 : vector<16x10xi32> to vector<16x10xf32>
    %c1_6 = arith.constant 1 : index
    %c0_7 = arith.constant 0 : index
    %c0_8 = arith.constant 0 : index
    %17 = vector.load %arg8[%c1_6, %c0_7, %c0_8] : memref<2x10x32xf32, #tpu.memory_space<vmem>>, vector<1x10x32xf32>
    %18 = vector.shape_cast %17 : vector<1x10x32xf32> to vector<10x32xf32>
    %cst_9 = arith.constant dense<0.000000e+00> : vector<16x32xf32>
    %19 = tpu.matmul %16, %18, %cst_9 {dimension_numbers = #tpu.dot_dimension_numbers<[1], [0], [0], [1], [0, 0, 1, 1], [], []>} : vector<16x10xf32>, vector<10x32xf32>, vector<16x32xf32> -> vector<16x32xf32>
    %20 = arith.addf %10, %19 : vector<16x32xf32>
    %cst_10 = arith.constant 0.000000e+00 : f32
    %21 = vector.broadcast %cst_10 : f32 to vector<32x32xf32>
    %c0_11 = arith.constant 0 : index
    %c0_12 = arith.constant 0 : index
    %22 = vector.load %arg1[%c0_11, %c0_12] : memref<32x2xi32, #tpu.memory_space<vmem>>, vector<32x1xi32>
    %23 = tpu.iota {dimensions = array<i32: 1>} : vector<32x5xi32>
    %24 = vector.broadcast %22 : vector<32x1xi32> to vector<32x5xi32>
    %25 = arith.cmpi eq, %24, %23 : vector<32x5xi32>
    %26 = arith.extui %25 : vector<32x5xi1> to vector<32x5xi32>
    %27 = arith.sitofp %26 : vector<32x5xi32> to vector<32x5xf32>
    %c0_13 = arith.constant 0 : index
    %c0_14 = arith.constant 0 : index
    %c0_15 = arith.constant 0 : index
    %28 = vector.load %arg9[%c0_13, %c0_14, %c0_15] : memref<2x5x32xf32, #tpu.memory_space<vmem>>, vector<1x5x32xf32>
    %29 = vector.shape_cast %28 : vector<1x5x32xf32> to vector<5x32xf32>
    %cst_16 = arith.constant dense<0.000000e+00> : vector<32x32xf32>
    %30 = tpu.matmul %27, %29, %cst_16 {dimension_numbers = #tpu.dot_dimension_numbers<[1], [0], [0], [1], [0, 0, 1, 1], [], []>} : vector<32x5xf32>, vector<5x32xf32>, vector<32x32xf32> -> vector<32x32xf32>
    %31 = arith.addf %21, %30 : vector<32x32xf32>
    %c0_17 = arith.constant 0 : index
    %c1_18 = arith.constant 1 : index
    %32 = vector.load %arg1[%c0_17, %c1_18] : memref<32x2xi32, #tpu.memory_space<vmem>>, vector<32x1xi32>
    %33 = tpu.iota {dimensions = array<i32: 1>} : vector<32x5xi32>
    %34 = vector.broadcast %32 : vector<32x1xi32> to vector<32x5xi32>
    %35 = arith.cmpi eq, %34, %33 : vector<32x5xi32>
    %36 = arith.extui %35 : vector<32x5xi1> to vector<32x5xi32>
    %37 = arith.sitofp %36 : vector<32x5xi32> to vector<32x5xf32>
    %c1_19 = arith.constant 1 : index
    %c0_20 = arith.constant 0 : index
    %c0_21 = arith.constant 0 : index
    %38 = vector.load %arg9[%c1_19, %c0_20, %c0_21] : memref<2x5x32xf32, #tpu.memory_space<vmem>>, vector<1x5x32xf32>
    %39 = vector.shape_cast %38 : vector<1x5x32xf32> to vector<5x32xf32>
    %cst_22 = arith.constant dense<0.000000e+00> : vector<32x32xf32>
    %40 = tpu.matmul %37, %39, %cst_22 {dimension_numbers = #tpu.dot_dimension_numbers<[1], [0], [0], [1], [0, 0, 1, 1], [], []>} : vector<32x5xf32>, vector<5x32xf32>, vector<32x32xf32> -> vector<32x32xf32>
    %41 = arith.addf %31, %40 : vector<32x32xf32>
    %c0_23 = arith.constant 0 : index
    %c0_24 = arith.constant 0 : index
    %42 = vector.load %arg2[%c0_23, %c0_24] : memref<32x1xi32, #tpu.memory_space<vmem>>, vector<32x1xi32>
    %43 = tpu.iota {dimensions = array<i32: 1>} : vector<32x16xi32>
    %44 = vector.broadcast %42 : vector<32x1xi32> to vector<32x16xi32>
    %45 = arith.cmpi eq, %44, %43 : vector<32x16xi32>
    %46 = arith.extui %45 : vector<32x16xi1> to vector<32x16xi32>
    %47 = arith.sitofp %46 : vector<32x16xi32> to vector<32x16xf32>
    %c0_25 = arith.constant 0 : index
    %c0_26 = arith.constant 0 : index
    %48 = vector.load %arg3[%c0_25, %c0_26] : memref<32x1xi32, #tpu.memory_space<vmem>>, vector<32x1xi32>
    %49 = tpu.iota {dimensions = array<i32: 1>} : vector<32x16xi32>
    %50 = vector.broadcast %48 : vector<32x1xi32> to vector<32x16xi32>
    %51 = arith.cmpi eq, %50, %49 : vector<32x16xi32>
    %52 = arith.extui %51 : vector<32x16xi1> to vector<32x16xi32>
    %53 = arith.sitofp %52 : vector<32x16xi32> to vector<32x16xf32>
    %54 = tpu.iota {dimensions = array<i32: 0>} : vector<16x32xi32>
    %c0_27 = arith.constant 0 : index
    %c0_28 = arith.constant 0 : index
    %55 = vector.load %arg4[%c0_27, %c0_28] : memref<1x32xi32, #tpu.memory_space<vmem>>, vector<1x32xi32>
    %56 = vector.broadcast %55 : vector<1x32xi32> to vector<16x32xi32>
    %57 = arith.cmpi eq, %54, %56 : vector<16x32xi32>
    %58 = arith.extui %57 : vector<16x32xi1> to vector<16x32xi32>
    %59 = arith.sitofp %58 : vector<16x32xi32> to vector<16x32xf32>
    %cst_29 = arith.constant dense<0.000000e+00> : vector<16xf32>
    %60 = vector.multi_reduction <add>, %59, %cst_29 [1] : vector<16x32xf32> to vector<16xf32>
    %61 = vector.shape_cast %60 : vector<16xf32> to vector<16x1xf32>
    %cst_30 = arith.constant 1.000000e+00 : f32
    %62 = vector.broadcast %cst_30 : f32 to vector<16x1xf32>
    %63 = arith.addf %61, %62 : vector<16x1xf32>
    %64 = math.log %63 : vector<16x1xf32>
    %cst_31 = arith.constant 1.000000e+00 : f32
    %65 = vector.broadcast %cst_31 : f32 to vector<16x1xf32>
    %66 = arith.mulf %64, %65 : vector<16x1xf32>
    %cst_32 = arith.constant 9.99999993E-9 : f32
    %67 = vector.broadcast %cst_32 : f32 to vector<16x1xf32>
    %68 = arith.maximumf %64, %67 : vector<16x1xf32>
    %cst_33 = arith.constant 1.000000e+00 : f32
    %69 = vector.broadcast %cst_33 : f32 to vector<16x1xf32>
    %70 = arith.divf %69, %68 : vector<16x1xf32>
    %71 = tpu.iota {dimensions = array<i32: 0>} : vector<16x1xi32>
    %cst_34 = arith.constant dense<0.000000e+00> : vector<32x32xf32>
    %72 = tpu.matmul %47, %20, %cst_34 {dimension_numbers = #tpu.dot_dimension_numbers<[1], [0], [0], [1], [0, 0, 1, 1], [], []>} : vector<32x16xf32>, vector<16x32xf32>, vector<32x32xf32> -> vector<32x32xf32>
    %cst_35 = arith.constant dense<0.000000e+00> : vector<32x32xf32>
    %73 = tpu.matmul %53, %20, %cst_35 {dimension_numbers = #tpu.dot_dimension_numbers<[1], [0], [0], [1], [0, 0, 1, 1], [], []>} : vector<32x16xf32>, vector<16x32xf32>, vector<32x32xf32> -> vector<32x32xf32>
    %c0_36 = arith.constant 0 : index
    %c0_37 = arith.constant 0 : index
    %c0_38 = arith.constant 0 : index
    %74 = vector.load %arg10[%c0_36, %c0_37, %c0_38] : memref<2x96x32xf32, #tpu.memory_space<vmem>>, vector<1x96x32xf32>
    %75 = vector.shape_cast %74 : vector<1x96x32xf32> to vector<96x32xf32>
    %76 = vector.extract_strided_slice %75 {offsets = [0, 0], sizes = [32, 32], strides = [1, 1]} : vector<96x32xf32> to vector<32x32xf32>
    %cst_39 = arith.constant dense<0.000000e+00> : vector<32x32xf32>
    %77 = tpu.matmul %72, %76, %cst_39 {dimension_numbers = #tpu.dot_dimension_numbers<[1], [0], [0], [1], [0, 0, 1, 1], [], []>} : vector<32x32xf32>, vector<32x32xf32>, vector<32x32xf32> -> vector<32x32xf32>
    %78 = vector.extract_strided_slice %75 {offsets = [32, 0], sizes = [32, 32], strides = [1, 1]} : vector<96x32xf32> to vector<32x32xf32>
    %cst_40 = arith.constant dense<0.000000e+00> : vector<32x32xf32>
    %79 = tpu.matmul %73, %78, %cst_40 {dimension_numbers = #tpu.dot_dimension_numbers<[1], [0], [0], [1], [0, 0, 1, 1], [], []>} : vector<32x32xf32>, vector<32x32xf32>, vector<32x32xf32> -> vector<32x32xf32>
    %80 = arith.addf %77, %79 : vector<32x32xf32>
    %81 = vector.extract_strided_slice %75 {offsets = [64, 0], sizes = [32, 32], strides = [1, 1]} : vector<96x32xf32> to vector<32x32xf32>
    %cst_41 = arith.constant dense<0.000000e+00> : vector<32x32xf32>
    %82 = tpu.matmul %41, %81, %cst_41 {dimension_numbers = #tpu.dot_dimension_numbers<[1], [0], [0], [1], [0, 0, 1, 1], [], []>} : vector<32x32xf32>, vector<32x32xf32>, vector<32x32xf32> -> vector<32x32xf32>
    %83 = arith.addf %80, %82 : vector<32x32xf32>
    %c0_42 = arith.constant 0 : index
    %c0_43 = arith.constant 0 : index
    %c0_44 = arith.constant 0 : index
    %84 = vector.load %arg11[%c0_42, %c0_43, %c0_44] : memref<2x1x32xf32, #tpu.memory_space<vmem>>, vector<1x1x32xf32>
    %85 = vector.shape_cast %84 : vector<1x1x32xf32> to vector<1x32xf32>
    %86 = vector.broadcast %85 : vector<1x32xf32> to vector<32x32xf32>
    %87 = arith.addf %83, %86 : vector<32x32xf32>
    %c0_45 = arith.constant 0 : index
    %c0_46 = arith.constant 0 : index
    %88 = vector.load %arg22[%c0_45, %c0_46] : memref<32x32xf32, #tpu.memory_space<vmem>>, vector<32x32xf32>
    tpu.vector_store %arg22[%c0_45, %c0_46], %87 {strides = array<i32>} : memref<32x32xf32, #tpu.memory_space<vmem>>, vector<32x32xf32>,
    %cst_47 = arith.constant dense<0.000000e+00> : vector<16x32xf32>
    %89 = tpu.matmul %59, %87, %cst_47 {dimension_numbers = #tpu.dot_dimension_numbers<[1], [0], [0], [1], [0, 0, 1, 1], [], []>} : vector<16x32xf32>, vector<32x32xf32>, vector<16x32xf32> -> vector<16x32xf32>
    %cst_48 = arith.constant 1.000000e+00 : f32
    %90 = vector.broadcast %cst_48 : f32 to vector<16x1xf32>
    %91 = arith.maximumf %61, %90 : vector<16x1xf32>
    %92 = vector.broadcast %91 : vector<16x1xf32> to vector<16x32xf32>
    %93 = arith.divf %89, %92 : vector<16x32xf32>
    %cst_49 = arith.constant -3.000000e+38 : f32
    %94 = vector.broadcast %cst_49 : f32 to vector<16x32xf32>
    %c0_i32 = arith.constant 0 : i32
    %c32_i32 = arith.constant 32 : i32
    %95 = arith.addi %c0_i32, %c32_i32 : i32
    %c1_i32 = arith.constant 1 : i32
    %96 = scf.for %arg23 = %c0_i32 to %95 step %c1_i32 iter_args(%arg24 = %94) -> (vector<16x32xf32>)  : i32 {
      %c0_144 = arith.constant 0 : index
      %257 = arith.index_cast %arg23 : i32 to index
      %258 = memref.load %arg6[%c0_144, %257] : memref<1x32xi32, #tpu.memory_space<smem>>
      %259 = arith.index_cast %arg23 : i32 to index
      %c0_145 = arith.constant 0 : index
      %260 = vector.load %arg22[%259, %c0_145] : memref<32x32xf32, #tpu.memory_space<vmem>>, vector<1x32xf32>
      %261 = vector.broadcast %258 : i32 to vector<16x1xi32>
      %262 = arith.cmpi eq, %71, %261 : vector<16x1xi32>
      %263 = vector.broadcast %260 : vector<1x32xf32> to vector<16x32xf32>
      %264 = arith.maximumf %arg24, %263 : vector<16x32xf32>
      %265 = vector.shape_cast %262 : vector<16x1xi1> to vector<16x1xi1>
      %266 = vector.broadcast %265 : vector<16x1xi1> to vector<16x32xi1>
      %267 = arith.select %266, %264, %arg24 : vector<16x32xi1>, vector<16x32xf32>
      scf.yield %267 : vector<16x32xf32>
    }
    %c32_i32_50 = arith.constant 32 : i32
    %cst_51 = arith.constant 0.000000e+00 : f32
    %97 = vector.broadcast %cst_51 : f32 to vector<16x1xf32>
    %98 = arith.cmpf ogt, %61, %97 : vector<16x1xf32>
    %cst_52 = arith.constant 0.000000e+00 : f32
    %99 = vector.shape_cast %98 : vector<16x1xi1> to vector<16x1xi1>
    %100 = vector.broadcast %99 : vector<16x1xi1> to vector<16x32xi1>
    %101 = vector.broadcast %cst_52 : f32 to vector<16x32xf32>
    %102 = arith.select %100, %96, %101 : vector<16x32xi1>, vector<16x32xf32>
    %103 = tpu.concatenate %93, %102, %89 in 1 : vector<16x32xf32>, vector<16x32xf32>, vector<16x32xf32> -> vector<16x96xf32>
    %c0_53 = arith.constant 0 : index
    %c0_54 = arith.constant 0 : index
    %c0_55 = arith.constant 0 : index
    %104 = vector.load %arg12[%c0_53, %c0_54, %c0_55] : memref<2x320x32xf32, #tpu.memory_space<vmem>>, vector<1x320x32xf32>
    %105 = vector.shape_cast %104 : vector<1x320x32xf32> to vector<320x32xf32>
    %106 = vector.extract_strided_slice %105 {offsets = [0, 0], sizes = [96, 32], strides = [1, 1]} : vector<320x32xf32> to vector<96x32xf32>
    %cst_56 = arith.constant dense<0.000000e+00> : vector<16x32xf32>
    %107 = tpu.matmul %103, %106, %cst_56 {dimension_numbers = #tpu.dot_dimension_numbers<[1], [0], [0], [1], [0, 0, 1, 1], [], []>} : vector<16x96xf32>, vector<96x32xf32>, vector<16x32xf32> -> vector<16x32xf32>
    %108 = vector.extract_strided_slice %105 {offsets = [96, 0], sizes = [96, 32], strides = [1, 1]} : vector<320x32xf32> to vector<96x32xf32>
    %cst_57 = arith.constant dense<0.000000e+00> : vector<16x32xf32>
    %109 = tpu.matmul %103, %108, %cst_57 {dimension_numbers = #tpu.dot_dimension_numbers<[1], [0], [0], [1], [0, 0, 1, 1], [], []>} : vector<16x96xf32>, vector<96x32xf32>, vector<16x32xf32> -> vector<16x32xf32>
    %110 = vector.broadcast %66 : vector<16x1xf32> to vector<16x32xf32>
    %111 = arith.mulf %110, %109 : vector<16x32xf32>
    %112 = arith.addf %107, %111 : vector<16x32xf32>
    %113 = vector.extract_strided_slice %105 {offsets = [192, 0], sizes = [96, 32], strides = [1, 1]} : vector<320x32xf32> to vector<96x32xf32>
    %cst_58 = arith.constant dense<0.000000e+00> : vector<16x32xf32>
    %114 = tpu.matmul %103, %113, %cst_58 {dimension_numbers = #tpu.dot_dimension_numbers<[1], [0], [0], [1], [0, 0, 1, 1], [], []>} : vector<16x96xf32>, vector<96x32xf32>, vector<16x32xf32> -> vector<16x32xf32>
    %115 = vector.broadcast %70 : vector<16x1xf32> to vector<16x32xf32>
    %116 = arith.mulf %115, %114 : vector<16x32xf32>
    %117 = arith.addf %112, %116 : vector<16x32xf32>
    %118 = vector.extract_strided_slice %105 {offsets = [288, 0], sizes = [32, 32], strides = [1, 1]} : vector<320x32xf32> to vector<32x32xf32>
    %cst_59 = arith.constant dense<0.000000e+00> : vector<16x32xf32>
    %119 = tpu.matmul %20, %118, %cst_59 {dimension_numbers = #tpu.dot_dimension_numbers<[1], [0], [0], [1], [0, 0, 1, 1], [], []>} : vector<16x32xf32>, vector<32x32xf32>, vector<16x32xf32> -> vector<16x32xf32>
    %120 = arith.addf %117, %119 : vector<16x32xf32>
    %c0_60 = arith.constant 0 : index
    %c0_61 = arith.constant 0 : index
    %c0_62 = arith.constant 0 : index
    %121 = vector.load %arg13[%c0_60, %c0_61, %c0_62] : memref<2x1x32xf32, #tpu.memory_space<vmem>>, vector<1x1x32xf32>
    %122 = vector.shape_cast %121 : vector<1x1x32xf32> to vector<1x32xf32>
    %123 = vector.broadcast %122 : vector<1x32xf32> to vector<16x32xf32>
    %124 = arith.addf %120, %123 : vector<16x32xf32>
    %cst_63 = arith.constant 0.000000e+00 : f32
    %125 = vector.broadcast %cst_63 : f32 to vector<16x32xf32>
    %126 = arith.maximumf %124, %125 : vector<16x32xf32>
    %c0_64 = arith.constant 0 : index
    %c0_65 = arith.constant 0 : index
    %c0_66 = arith.constant 0 : index
    %127 = vector.load %arg14[%c0_64, %c0_65, %c0_66] : memref<2x32x32xf32, #tpu.memory_space<vmem>>, vector<1x32x32xf32>
    %128 = vector.shape_cast %127 : vector<1x32x32xf32> to vector<32x32xf32>
    %cst_67 = arith.constant dense<0.000000e+00> : vector<16x32xf32>
    %129 = tpu.matmul %126, %128, %cst_67 {dimension_numbers = #tpu.dot_dimension_numbers<[1], [0], [0], [1], [0, 0, 1, 1], [], []>} : vector<16x32xf32>, vector<32x32xf32>, vector<16x32xf32> -> vector<16x32xf32>
    %c0_68 = arith.constant 0 : index
    %c0_69 = arith.constant 0 : index
    %c0_70 = arith.constant 0 : index
    %130 = vector.load %arg15[%c0_68, %c0_69, %c0_70] : memref<2x1x32xf32, #tpu.memory_space<vmem>>, vector<1x1x32xf32>
    %131 = vector.shape_cast %130 : vector<1x1x32xf32> to vector<1x32xf32>
    %132 = vector.broadcast %131 : vector<1x32xf32> to vector<16x32xf32>
    %133 = arith.addf %129, %132 : vector<16x32xf32>
    %134 = arith.addf %133, %20 : vector<16x32xf32>
    %cst_71 = arith.constant dense<0.000000e+00> : vector<32x32xf32>
    %135 = tpu.matmul %47, %134, %cst_71 {dimension_numbers = #tpu.dot_dimension_numbers<[1], [0], [0], [1], [0, 0, 1, 1], [], []>} : vector<32x16xf32>, vector<16x32xf32>, vector<32x32xf32> -> vector<32x32xf32>
    %cst_72 = arith.constant dense<0.000000e+00> : vector<32x32xf32>
    %136 = tpu.matmul %53, %134, %cst_72 {dimension_numbers = #tpu.dot_dimension_numbers<[1], [0], [0], [1], [0, 0, 1, 1], [], []>} : vector<32x16xf32>, vector<16x32xf32>, vector<32x32xf32> -> vector<32x32xf32>
    %c1_73 = arith.constant 1 : index
    %c0_74 = arith.constant 0 : index
    %c0_75 = arith.constant 0 : index
    %137 = vector.load %arg10[%c1_73, %c0_74, %c0_75] : memref<2x96x32xf32, #tpu.memory_space<vmem>>, vector<1x96x32xf32>
    %138 = vector.shape_cast %137 : vector<1x96x32xf32> to vector<96x32xf32>
    %139 = vector.extract_strided_slice %138 {offsets = [0, 0], sizes = [32, 32], strides = [1, 1]} : vector<96x32xf32> to vector<32x32xf32>
    %cst_76 = arith.constant dense<0.000000e+00> : vector<32x32xf32>
    %140 = tpu.matmul %135, %139, %cst_76 {dimension_numbers = #tpu.dot_dimension_numbers<[1], [0], [0], [1], [0, 0, 1, 1], [], []>} : vector<32x32xf32>, vector<32x32xf32>, vector<32x32xf32> -> vector<32x32xf32>
    %141 = vector.extract_strided_slice %138 {offsets = [32, 0], sizes = [32, 32], strides = [1, 1]} : vector<96x32xf32> to vector<32x32xf32>
    %cst_77 = arith.constant dense<0.000000e+00> : vector<32x32xf32>
    %142 = tpu.matmul %136, %141, %cst_77 {dimension_numbers = #tpu.dot_dimension_numbers<[1], [0], [0], [1], [0, 0, 1, 1], [], []>} : vector<32x32xf32>, vector<32x32xf32>, vector<32x32xf32> -> vector<32x32xf32>
    %143 = arith.addf %140, %142 : vector<32x32xf32>
    %144 = vector.extract_strided_slice %138 {offsets = [64, 0], sizes = [32, 32], strides = [1, 1]} : vector<96x32xf32> to vector<32x32xf32>
    %cst_78 = arith.constant dense<0.000000e+00> : vector<32x32xf32>
    %145 = tpu.matmul %41, %144, %cst_78 {dimension_numbers = #tpu.dot_dimension_numbers<[1], [0], [0], [1], [0, 0, 1, 1], [], []>} : vector<32x32xf32>, vector<32x32xf32>, vector<32x32xf32> -> vector<32x32xf32>
    %146 = arith.addf %143, %145 : vector<32x32xf32>
    %c1_79 = arith.constant 1 : index
    %c0_80 = arith.constant 0 : index
    %c0_81 = arith.constant 0 : index
    %147 = vector.load %arg11[%c1_79, %c0_80, %c0_81] : memref<2x1x32xf32, #tpu.memory_space<vmem>>, vector<1x1x32xf32>
    %148 = vector.shape_cast %147 : vector<1x1x32xf32> to vector<1x32xf32>
    %149 = vector.broadcast %148 : vector<1x32xf32> to vector<32x32xf32>
    %150 = arith.addf %146, %149 : vector<32x32xf32>
    %c0_82 = arith.constant 0 : index
    %c0_83 = arith.constant 0 : index
    %151 = vector.load %arg22[%c0_82, %c0_83] : memref<32x32xf32, #tpu.memory_space<vmem>>, vector<32x32xf32>
    tpu.vector_store %arg22[%c0_82, %c0_83], %150 {strides = array<i32>} : memref<32x32xf32, #tpu.memory_space<vmem>>, vector<32x32xf32>,
    %cst_84 = arith.constant dense<0.000000e+00> : vector<16x32xf32>
    %152 = tpu.matmul %59, %150, %cst_84 {dimension_numbers = #tpu.dot_dimension_numbers<[1], [0], [0], [1], [0, 0, 1, 1], [], []>} : vector<16x32xf32>, vector<32x32xf32>, vector<16x32xf32> -> vector<16x32xf32>
    %cst_85 = arith.constant 1.000000e+00 : f32
    %153 = vector.broadcast %cst_85 : f32 to vector<16x1xf32>
    %154 = arith.maximumf %61, %153 : vector<16x1xf32>
    %155 = vector.broadcast %154 : vector<16x1xf32> to vector<16x32xf32>
    %156 = arith.divf %152, %155 : vector<16x32xf32>
    %cst_86 = arith.constant -3.000000e+38 : f32
    %157 = vector.broadcast %cst_86 : f32 to vector<16x32xf32>
    %c0_i32_87 = arith.constant 0 : i32
    %c32_i32_88 = arith.constant 32 : i32
    %158 = arith.addi %c0_i32_87, %c32_i32_88 : i32
    %c1_i32_89 = arith.constant 1 : i32
    %159 = scf.for %arg23 = %c0_i32_87 to %158 step %c1_i32_89 iter_args(%arg24 = %157) -> (vector<16x32xf32>)  : i32 {
      %c0_144 = arith.constant 0 : index
      %257 = arith.index_cast %arg23 : i32 to index
      %258 = memref.load %arg6[%c0_144, %257] : memref<1x32xi32, #tpu.memory_space<smem>>
      %259 = arith.index_cast %arg23 : i32 to index
      %c0_145 = arith.constant 0 : index
      %260 = vector.load %arg22[%259, %c0_145] : memref<32x32xf32, #tpu.memory_space<vmem>>, vector<1x32xf32>
      %261 = vector.broadcast %258 : i32 to vector<16x1xi32>
      %262 = arith.cmpi eq, %71, %261 : vector<16x1xi32>
      %263 = vector.broadcast %260 : vector<1x32xf32> to vector<16x32xf32>
      %264 = arith.maximumf %arg24, %263 : vector<16x32xf32>
      %265 = vector.shape_cast %262 : vector<16x1xi1> to vector<16x1xi1>
      %266 = vector.broadcast %265 : vector<16x1xi1> to vector<16x32xi1>
      %267 = arith.select %266, %264, %arg24 : vector<16x32xi1>, vector<16x32xf32>
      scf.yield %267 : vector<16x32xf32>
    }
    %c32_i32_90 = arith.constant 32 : i32
    %cst_91 = arith.constant 0.000000e+00 : f32
    %160 = vector.broadcast %cst_91 : f32 to vector<16x1xf32>
    %161 = arith.cmpf ogt, %61, %160 : vector<16x1xf32>
    %cst_92 = arith.constant 0.000000e+00 : f32
    %162 = vector.shape_cast %161 : vector<16x1xi1> to vector<16x1xi1>
    %163 = vector.broadcast %162 : vector<16x1xi1> to vector<16x32xi1>
    %164 = vector.broadcast %cst_92 : f32 to vector<16x32xf32>
    %165 = arith.select %163, %159, %164 : vector<16x32xi1>, vector<16x32xf32>
    %166 = tpu.concatenate %156, %165, %152 in 1 : vector<16x32xf32>, vector<16x32xf32>, vector<16x32xf32> -> vector<16x96xf32>
    %c1_93 = arith.constant 1 : index
    %c0_94 = arith.constant 0 : index
    %c0_95 = arith.constant 0 : index
    %167 = vector.load %arg12[%c1_93, %c0_94, %c0_95] : memref<2x320x32xf32, #tpu.memory_space<vmem>>, vector<1x320x32xf32>
    %168 = vector.shape_cast %167 : vector<1x320x32xf32> to vector<320x32xf32>
    %169 = vector.extract_strided_slice %168 {offsets = [0, 0], sizes = [96, 32], strides = [1, 1]} : vector<320x32xf32> to vector<96x32xf32>
    %cst_96 = arith.constant dense<0.000000e+00> : vector<16x32xf32>
    %170 = tpu.matmul %166, %169, %cst_96 {dimension_numbers = #tpu.dot_dimension_numbers<[1], [0], [0], [1], [0, 0, 1, 1], [], []>} : vector<16x96xf32>, vector<96x32xf32>, vector<16x32xf32> -> vector<16x32xf32>
    %171 = vector.extract_strided_slice %168 {offsets = [96, 0], sizes = [96, 32], strides = [1, 1]} : vector<320x32xf32> to vector<96x32xf32>
    %cst_97 = arith.constant dense<0.000000e+00> : vector<16x32xf32>
    %172 = tpu.matmul %166, %171, %cst_97 {dimension_numbers = #tpu.dot_dimension_numbers<[1], [0], [0], [1], [0, 0, 1, 1], [], []>} : vector<16x96xf32>, vector<96x32xf32>, vector<16x32xf32> -> vector<16x32xf32>
    %173 = vector.broadcast %66 : vector<16x1xf32> to vector<16x32xf32>
    %174 = arith.mulf %173, %172 : vector<16x32xf32>
    %175 = arith.addf %170, %174 : vector<16x32xf32>
    %176 = vector.extract_strided_slice %168 {offsets = [192, 0], sizes = [96, 32], strides = [1, 1]} : vector<320x32xf32> to vector<96x32xf32>
    %cst_98 = arith.constant dense<0.000000e+00> : vector<16x32xf32>
    %177 = tpu.matmul %166, %176, %cst_98 {dimension_numbers = #tpu.dot_dimension_numbers<[1], [0], [0], [1], [0, 0, 1, 1], [], []>} : vector<16x96xf32>, vector<96x32xf32>, vector<16x32xf32> -> vector<16x32xf32>
    %178 = vector.broadcast %70 : vector<16x1xf32> to vector<16x32xf32>
    %179 = arith.mulf %178, %177 : vector<16x32xf32>
    %180 = arith.addf %175, %179 : vector<16x32xf32>
    %181 = vector.extract_strided_slice %168 {offsets = [288, 0], sizes = [32, 32], strides = [1, 1]} : vector<320x32xf32> to vector<32x32xf32>
    %cst_99 = arith.constant dense<0.000000e+00> : vector<16x32xf32>
    %182 = tpu.matmul %134, %181, %cst_99 {dimension_numbers = #tpu.dot_dimension_numbers<[1], [0], [0], [1], [0, 0, 1, 1], [], []>} : vector<16x32xf32>, vector<32x32xf32>, vector<16x32xf32> -> vector<16x32xf32>
    %183 = arith.addf %180, %182 : vector<16x32xf32>
    %c1_100 = arith.constant 1 : index
    %c0_101 = arith.constant 0 : index
    %c0_102 = arith.constant 0 : index
    %184 = vector.load %arg13[%c1_100, %c0_101, %c0_102] : memref<2x1x32xf32, #tpu.memory_space<vmem>>, vector<1x1x32xf32>
    %185 = vector.shape_cast %184 : vector<1x1x32xf32> to vector<1x32xf32>
    %186 = vector.broadcast %185 : vector<1x32xf32> to vector<16x32xf32>
    %187 = arith.addf %183, %186 : vector<16x32xf32>
    %cst_103 = arith.constant 0.000000e+00 : f32
    %188 = vector.broadcast %cst_103 : f32 to vector<16x32xf32>
    %189 = arith.maximumf %187, %188 : vector<16x32xf32>
    %c1_104 = arith.constant 1 : index
    %c0_105 = arith.constant 0 : index
    %c0_106 = arith.constant 0 : index
    %190 = vector.load %arg14[%c1_104, %c0_105, %c0_106] : memref<2x32x32xf32, #tpu.memory_space<vmem>>, vector<1x32x32xf32>
    %191 = vector.shape_cast %190 : vector<1x32x32xf32> to vector<32x32xf32>
    %cst_107 = arith.constant dense<0.000000e+00> : vector<16x32xf32>
    %192 = tpu.matmul %189, %191, %cst_107 {dimension_numbers = #tpu.dot_dimension_numbers<[1], [0], [0], [1], [0, 0, 1, 1], [], []>} : vector<16x32xf32>, vector<32x32xf32>, vector<16x32xf32> -> vector<16x32xf32>
    %c1_108 = arith.constant 1 : index
    %c0_109 = arith.constant 0 : index
    %c0_110 = arith.constant 0 : index
    %193 = vector.load %arg15[%c1_108, %c0_109, %c0_110] : memref<2x1x32xf32, #tpu.memory_space<vmem>>, vector<1x1x32xf32>
    %194 = vector.shape_cast %193 : vector<1x1x32xf32> to vector<1x32xf32>
    %195 = vector.broadcast %194 : vector<1x32xf32> to vector<16x32xf32>
    %196 = arith.addf %192, %195 : vector<16x32xf32>
    %197 = arith.addf %196, %134 : vector<16x32xf32>
    %c0_111 = arith.constant 0 : index
    %c0_112 = arith.constant 0 : index
    %198 = vector.load %arg20[%c0_111, %c0_112] : memref<16x32xf32, #tpu.memory_space<vmem>>, vector<16x32xf32>
    tpu.vector_store %arg20[%c0_111, %c0_112], %197 {strides = array<i32>} : memref<16x32xf32, #tpu.memory_space<vmem>>, vector<16x32xf32>,
    %199 = tpu.iota {dimensions = array<i32: 0>} : vector<2x16xi32>
    %c0_113 = arith.constant 0 : index
    %c0_114 = arith.constant 0 : index
    %200 = vector.load %arg5[%c0_113, %c0_114] : memref<1x16xi32, #tpu.memory_space<vmem>>, vector<1x16xi32>
    %201 = vector.broadcast %200 : vector<1x16xi32> to vector<2x16xi32>
    %202 = arith.cmpi eq, %199, %201 : vector<2x16xi32>
    %203 = arith.extui %202 : vector<2x16xi1> to vector<2x16xi32>
    %204 = arith.sitofp %203 : vector<2x16xi32> to vector<2x16xf32>
    %cst_115 = arith.constant dense<0.000000e+00> : vector<2xf32>
    %205 = vector.multi_reduction <add>, %204, %cst_115 [1] : vector<2x16xf32> to vector<2xf32>
    %206 = vector.shape_cast %205 : vector<2xf32> to vector<2x1xf32>
    %cst_116 = arith.constant dense<0.000000e+00> : vector<2x32xf32>
    %207 = tpu.matmul %204, %197, %cst_116 {dimension_numbers = #tpu.dot_dimension_numbers<[1], [0], [0], [1], [0, 0, 1, 1], [], []>} : vector<2x16xf32>, vector<16x32xf32>, vector<2x32xf32> -> vector<2x32xf32>
    %cst_117 = arith.constant 1.000000e+00 : f32
    %208 = vector.broadcast %cst_117 : f32 to vector<2x1xf32>
    %209 = arith.maximumf %206, %208 : vector<2x1xf32>
    %210 = vector.broadcast %209 : vector<2x1xf32> to vector<2x32xf32>
    %211 = arith.divf %207, %210 : vector<2x32xf32>
    %212 = tpu.iota {dimensions = array<i32: 0>} : vector<2x1xi32>
    %cst_118 = arith.constant -3.000000e+38 : f32
    %213 = vector.broadcast %cst_118 : f32 to vector<2x32xf32>
    %cst_119 = arith.constant 3.000000e+38 : f32
    %214 = vector.broadcast %cst_119 : f32 to vector<2x32xf32>
    %c0_i32_120 = arith.constant 0 : i32
    %c16_i32 = arith.constant 16 : i32
    %215 = arith.addi %c0_i32_120, %c16_i32 : i32
    %c1_i32_121 = arith.constant 1 : i32
    %216:2 = scf.for %arg23 = %c0_i32_120 to %215 step %c1_i32_121 iter_args(%arg24 = %213, %arg25 = %214) -> (vector<2x32xf32>, vector<2x32xf32>)  : i32 {
      %c0_144 = arith.constant 0 : index
      %257 = arith.index_cast %arg23 : i32 to index
      %258 = memref.load %arg7[%c0_144, %257] : memref<1x16xi32, #tpu.memory_space<smem>>
      %259 = arith.index_cast %arg23 : i32 to index
      %c0_145 = arith.constant 0 : index
      %260 = vector.load %arg20[%259, %c0_145] : memref<16x32xf32, #tpu.memory_space<vmem>>, vector<1x32xf32>
      %261 = vector.broadcast %258 : i32 to vector<2x1xi32>
      %262 = arith.cmpi eq, %212, %261 : vector<2x1xi32>
      %263 = vector.broadcast %260 : vector<1x32xf32> to vector<2x32xf32>
      %264 = arith.maximumf %arg24, %263 : vector<2x32xf32>
      %265 = vector.shape_cast %262 : vector<2x1xi1> to vector<2x1xi1>
      %266 = vector.broadcast %265 : vector<2x1xi1> to vector<2x32xi1>
      %267 = arith.select %266, %264, %arg24 : vector<2x32xi1>, vector<2x32xf32>
      %268 = vector.broadcast %260 : vector<1x32xf32> to vector<2x32xf32>
      %269 = arith.minimumf %arg25, %268 : vector<2x32xf32>
      %270 = vector.shape_cast %262 : vector<2x1xi1> to vector<2x1xi1>
      %271 = vector.broadcast %270 : vector<2x1xi1> to vector<2x32xi1>
      %272 = arith.select %271, %269, %arg25 : vector<2x32xi1>, vector<2x32xf32>
      scf.yield %267, %272 : vector<2x32xf32>, vector<2x32xf32>
    }
    %c16_i32_122 = arith.constant 16 : i32
    %cst_123 = arith.constant 0.000000e+00 : f32
    %217 = vector.broadcast %cst_123 : f32 to vector<2x1xf32>
    %218 = arith.cmpf ogt, %206, %217 : vector<2x1xf32>
    %cst_124 = arith.constant 0.000000e+00 : f32
    %219 = vector.shape_cast %218 : vector<2x1xi1> to vector<2x1xi1>
    %220 = vector.broadcast %219 : vector<2x1xi1> to vector<2x32xi1>
    %221 = vector.broadcast %cst_124 : f32 to vector<2x32xf32>
    %222 = arith.select %220, %216#0, %221 : vector<2x32xi1>, vector<2x32xf32>
    %cst_125 = arith.constant 0.000000e+00 : f32
    %223 = vector.broadcast %cst_125 : f32 to vector<2x1xf32>
    %224 = arith.cmpf ogt, %206, %223 : vector<2x1xf32>
    %cst_126 = arith.constant 0.000000e+00 : f32
    %225 = vector.shape_cast %224 : vector<2x1xi1> to vector<2x1xi1>
    %226 = vector.broadcast %225 : vector<2x1xi1> to vector<2x32xi1>
    %227 = vector.broadcast %cst_126 : f32 to vector<2x32xf32>
    %228 = arith.select %226, %216#1, %227 : vector<2x32xi1>, vector<2x32xf32>
    %229 = tpu.concatenate %211, %207, %222, %228 in 1 : vector<2x32xf32>, vector<2x32xf32>, vector<2x32xf32>, vector<2x32xf32> -> vector<2x128xf32>
    %230 = arith.cmpf one, %229, %229 : vector<2x128xf32>
    %231 = math.absf %229 : vector<2x128xf32>
    %cst_127 = arith.constant 0x7F800000 : f32
    %232 = vector.broadcast %cst_127 : f32 to vector<2x128xf32>
    %233 = arith.cmpf oeq, %231, %232 : vector<2x128xf32>
    %234 = arith.ori %230, %233 : vector<2x128xi1>
    %cst_128 = arith.constant 0.000000e+00 : f32
    %235 = vector.broadcast %cst_128 : f32 to vector<2x128xf32>
    %236 = arith.select %234, %235, %229 : vector<2x128xi1>, vector<2x128xf32>
    %c0_129 = arith.constant 0 : index
    %c0_130 = arith.constant 0 : index
    %237 = vector.load %arg16[%c0_129, %c0_130] : memref<128x32xf32, #tpu.memory_space<vmem>>, vector<128x32xf32>
    %cst_131 = arith.constant dense<0.000000e+00> : vector<2x32xf32>
    %238 = tpu.matmul %236, %237, %cst_131 {dimension_numbers = #tpu.dot_dimension_numbers<[1], [0], [0], [1], [0, 0, 1, 1], [], []>} : vector<2x128xf32>, vector<128x32xf32>, vector<2x32xf32> -> vector<2x32xf32>
    %c0_132 = arith.constant 0 : index
    %c0_133 = arith.constant 0 : index
    %239 = vector.load %arg17[%c0_132, %c0_133] : memref<1x32xf32, #tpu.memory_space<vmem>>, vector<1x32xf32>
    %240 = vector.broadcast %239 : vector<1x32xf32> to vector<2x32xf32>
    %241 = arith.addf %238, %240 : vector<2x32xf32>
    %cst_134 = arith.constant 0.000000e+00 : f32
    %242 = vector.broadcast %cst_134 : f32 to vector<2x32xf32>
    %243 = arith.maximumf %241, %242 : vector<2x32xf32>
    %c0_135 = arith.constant 0 : index
    %c0_136 = arith.constant 0 : index
    %244 = vector.load %arg18[%c0_135, %c0_136] : memref<32x8xf32, #tpu.memory_space<vmem>>, vector<32x8xf32>
    %cst_137 = arith.constant dense<0.000000e+00> : vector<2x8xf32>
    %245 = tpu.matmul %243, %244, %cst_137 {dimension_numbers = #tpu.dot_dimension_numbers<[1], [0], [0], [1], [0, 0, 1, 1], [], []>} : vector<2x32xf32>, vector<32x8xf32>, vector<2x8xf32> -> vector<2x8xf32>
    %c0_138 = arith.constant 0 : index
    %c0_139 = arith.constant 0 : index
    %246 = vector.load %arg19[%c0_138, %c0_139] : memref<1x8xf32, #tpu.memory_space<vmem>>, vector<1x8xf32>
    %247 = vector.broadcast %246 : vector<1x8xf32> to vector<2x8xf32>
    %248 = arith.addf %245, %247 : vector<2x8xf32>
    %249 = arith.cmpf one, %248, %248 : vector<2x8xf32>
    %250 = math.absf %248 : vector<2x8xf32>
    %cst_140 = arith.constant 0x7F800000 : f32
    %251 = vector.broadcast %cst_140 : f32 to vector<2x8xf32>
    %252 = arith.cmpf oeq, %250, %251 : vector<2x8xf32>
    %253 = arith.ori %249, %252 : vector<2x8xi1>
    %cst_141 = arith.constant 0.000000e+00 : f32
    %254 = vector.broadcast %cst_141 : f32 to vector<2x8xf32>
    %255 = arith.select %253, %254, %248 : vector<2x8xi1>, vector<2x8xf32>
    %c0_142 = arith.constant 0 : index
    %c0_143 = arith.constant 0 : index
    %256 = vector.load %arg21[%c0_142, %c0_143] : memref<2x8xf32, #tpu.memory_space<vmem>>, vector<2x8xf32>
    tpu.vector_store %arg21[%c0_142, %c0_143], %255 {strides = array<i32>} : memref<2x8xf32, #tpu.memory_space<vmem>>, vector<2x8xf32>,
    return
  }
}

</mosaic_0001>

<bundles_post_ra>
// kernel: forward.1
= control target key start
LH: loop header
LB: loop body
LE: loop exit
PB: predicated region body
PF: predicated region fallthrough
CT: control target
= control target key end

     0   :  { %s2990_s0 = inlined_call_operand.vmem [shape: s32[16,2], index: 0, kind: input, shape index: {}]   ;;  %s2991_s1 = inlined_call_operand.vmem [shape: s32[32,2], index: 1, kind: input, shape index: {}]   ;;  %s2992_s2 = inlined_call_operand.hbm [shape: s32[32,1], index: 2, kind: input, shape index: {}]   ;;  %s2993_s3 = inlined_call_operand.hbm [shape: s32[32,1], index: 3, kind: input, shape index: {}]   ;;  %s2994_s4 = inlined_call_operand.vmem [shape: s32[1,32], index: 4, kind: input, shape index: {}, may-alias: {4,6}]   ;;  %s2995_s5 = inlined_call_operand.vmem [shape: s32[1,16], index: 5, kind: input, shape index: {}, may-alias: {5,7}]   ;;  %s2996_s6 = inlined_call_operand.vmem [shape: s32[1,32], index: 6, kind: input, shape index: {}, may-alias: {4,6}]   ;;  %s2997_s7 = inlined_call_operand.vmem [shape: s32[1,16], index: 7, kind: input, shape index: {}, may-alias: {5,7}]   ;;  %s2998_s8 = inlined_call_operand.hbm [shape: f32[2,10,32], index: 8, kind: input, shape index: {}]   ;;  %s2999_s9 = inlined_call_operand.vmem [shape: f32[2,5,32], index: 9, kind: input, shape index: {}]   ;;  %s3000_s10 = inlined_call_operand.hbm [shape: f32[2,96,32], index: 10, kind: input, shape index: {}]   ;;  %s3001_s11 = inlined_call_operand.vmem [shape: f32[2,1,32], index: 11, kind: input, shape index: {}, may-alias: {11,13,15}]   ;;  %s3002_s12 = inlined_call_operand.hbm [shape: f32[2,320,32], index: 12, kind: input, shape index: {}]   ;;  %s3003_s13 = inlined_call_operand.vmem [shape: f32[2,1,32], index: 13, kind: input, shape index: {}, may-alias: {11,13,15}]   ;;  %s3004_s14 = inlined_call_operand.hbm [shape: f32[2,32,32], index: 14, kind: input, shape index: {}]   ;;  %s3005_s15 = inlined_call_operand.vmem [shape: f32[2,1,32], index: 15, kind: input, shape index: {}, may-alias: {11,13,15}]   ;;  %s3006_s16 = inlined_call_operand.hbm [shape: f32[128,32], index: 16, kind: input, shape index: {}]   ;;  %s3007_s17 = inlined_call_operand.vmem [shape: f32[1,32], index: 17, kind: input, shape index: {}]   ;;  %s3008_s18 = inlined_call_operand.vmem [shape: f32[32,8], index: 18, kind: input, shape index: {}]   ;;  %s3009_s19 = inlined_call_operand.vmem [shape: f32[1,8], index: 19, kind: input, shape index: {}]   ;;  %s3010_s20 = inlined_call_operand.hbm [shape: f32[16,32], index: 20, kind: output, shape index: {0}]   ;;  %s3011_s21 = inlined_call_operand.hbm [shape: f32[2,8], index: 21, kind: output, shape index: {1}]  }
   0x1   :  { %3014 = sst [smem:[#allocation31_spill]] %s2990_s0 }
   0x2   :  { %3015 = sst [smem:[#allocation32_spill]] %s2991_s1 }
   0x3   :  { %3016 = sst [smem:[#allocation33_spill]] %s2992_s2 }
   0x4   :  { %3017 = sst [smem:[#allocation34_spill]] %s2993_s3 }
   0x5   :  { %3018 = sst [smem:[#allocation35_spill]] %s2994_s4 }
   0x6   :  { %3019 = sst [smem:[#allocation36_spill]] %s2995_s5 }
   0x7   :  { %27 = vsyncpa [#allocation4], 0 }
   0x8   :  { %28 = vsyncpa [#allocation8], 0 }
   0x9   :  { %29 = vsyncpa [#allocation6], 0 }
   0xa   :  { %30 = vsyncpa [#allocation11], 0 }
   0xb   :  { %31 = vsyncpa [#allocation14], 0 }
   0xc   :  { %32 = vsyncpa [#allocation17], 0 }
   0xd   :  { %33 = vsyncpa [#allocation5], 0 }
   0xe   :  { %34 = vsyncpa [#allocation21], 0  ;;  %s3020_s26 = sld [smem:[#allocation34_spill]]  ;;  %s2402_s3 = smov [#allocation7]  }
   0xf   :  { %s58_s28 = sshll.u32 %s2402_s3, 4  ;;  %s106_s4 = sshll.u32 %s3000_s10, 4  ;;  %s59_s28 = int_to_ptr.vmem [resolvable:$true] %s58_s28  ;;  %s107_s4 = int_to_ptr.hbm [resolvable:$true] %s106_s4 }
  0x10   :  { %s2403_s30 = smov 128   ;;  %s2404_s5 = smov 8  }
  0x11   :  { %s2405_s22 = smov [#allocation13]   ;;  %s136_s2 = sshll.u32 %s3004_s14, 4  ;;  %s137_s2 = int_to_ptr.hbm [resolvable:$true] %s136_s2 }
  0x12   :  { %s108_s23 = sshll.u32 %s2405_s22, 4  ;;  %s2406_s29 = smov [#allocation16]   ;;  %s109_s23 = int_to_ptr.vmem [resolvable:$true] %s108_s23 }
  0x13   :  { %114 = dma.hbm_to_vmem [thread:$0]  %s107_s4, 3072, %s109_s23, [#allocation14], %s2403_s30, %s2403_s30, %s2404_s5  }
  0x14   :  { %s56_s27 = sshll.u32 %s3020_s26, 4  ;;  %s3021_s26 = sld [smem:[#allocation33_spill]]  ;;  %s57_s27 = int_to_ptr.hbm [resolvable:$true] %s56_s27 }
  0x15   :  { %64 = dma.hbm_to_vmem [thread:$0]  %s57_s27, 512, %s59_s28, [#allocation8], %s2403_s30, %s2403_s30, %s2404_s5  }
  0x16   :  { %s138_s0 = sshll.u32 %s2406_s29, 4  ;;  %s2407_s27 = smov [#allocation3]   ;;  %s139_s0 = int_to_ptr.vmem [resolvable:$true] %s138_s0 }
  0x17   :  { %144 = dma.hbm_to_vmem [thread:$0]  %s137_s2, 1024, %s139_s0, [#allocation17], %s2403_s30, %s2403_s30, %s2404_s5  }
  0x18   :  { %s45_s14 = sshll.u32 %s2407_s27, 4  ;;  %s74_s1 = sshll.u32 %s2996_s6, 4  ;;  %s46_s14 = int_to_ptr.vmem [resolvable:$true] %s45_s14  ;;  %s75_s1 = int_to_ptr.vmem [resolvable:$true] %s74_s1 }
  0x19   :  { %s83_s24 = sshll.u32 %s2997_s7, 4  ;;  %s2408_s10 = smov [#allocation9]   ;;  %s84_s24 = int_to_ptr.vmem [resolvable:$true] %s83_s24 }
  0x1a   :  { %s43_s3 = sshll.u32 %s3021_s26, 4  ;;  %s2409_s2 = smov [#allocation10]   ;;  %s44_s3 = int_to_ptr.hbm [resolvable:$true] %s43_s3 }
  0x1b   :  { %51 = dma.hbm_to_vmem [thread:$0]  %s44_s3, 512, %s46_s14, [#allocation4], %s2403_s30, %s2403_s30, %s2404_s5  }
  0x1c   :  { %77 = dma.vmem_to_smem %s75_s1, 16, %s2408_s10, [#allocation6]  }
  0x1d   :  { %86 = dma.vmem_to_smem %s84_s24, 16, %s2409_s2, [#allocation11]  }
  0x1e   :  { %s91_s29 = sshll.u32 %s2998_s8, 4  ;;  %s2410_s6 = smov [#allocation12]   ;;  %s92_s29 = int_to_ptr.hbm [resolvable:$true] %s91_s29 }
  0x1f   :  { %s93_s0 = sshll.u32 %s2410_s6, 4  ;;  %s121_s3 = sshll.u32 %s3002_s12, 4  ;;  %s94_s0 = int_to_ptr.vmem [resolvable:$true] %s93_s0  ;;  %s122_s3 = int_to_ptr.hbm [resolvable:$true] %s121_s3 }
  0x20   :  { %99 = dma.hbm_to_vmem [thread:$0]  %s92_s29, 512, %s94_s0, [#allocation8], %s2403_s30, %s2403_s30, %s2404_s5  }
  0x21   :  { %s2411_s7 = smov [#allocation15]   ;;  %s151_s4 = sshll.u32 %s3006_s16, 4  ;;  %s152_s4 = int_to_ptr.hbm [resolvable:$true] %s151_s4 }
  0x22   :  { %s123_s14 = sshll.u32 %s2411_s7, 4  ;;  %s2412_s8 = smov [#allocation18]   ;;  %s124_s14 = int_to_ptr.vmem [resolvable:$true] %s123_s14 }
  0x23   :  { %129 = dma.hbm_to_vmem [thread:$0]  %s122_s3, 10240, %s124_s14, [#allocation14], %s2403_s30, %s2403_s30, %s2404_s5  }
  0x24   :  { %s153_s23 = sshll.u32 %s2412_s8, 4  ;;  %s154_s23 = int_to_ptr.vmem [resolvable:$true] %s153_s23 }
  0x25   :  { %159 = dma.hbm_to_vmem [thread:$0]  %s152_s4, 2048, %s154_s23, [#allocation17], %s2403_s30, %s2403_s30, %s2404_s5  }
  0x26   :  { %2348 = dma.done.wait [#allocation4], 512  }
  0x27   :  { %2349 = vsyncadd [#allocation4], 4294966784 }
  0x28   :  { %2350 = dma.done.wait [#allocation8], 512  }
  0x29   :  { %2351 = vsyncadd [#allocation8], 4294966784 }
  0x2a   :  { %2352 = dma.done.wait [#allocation6], 16  }
  0x2b   :  { %2353 = vsyncadd [#allocation6], 4294967280 }
  0x2c   :  { %2354 = dma.done.wait [#allocation11], 16  }
  0x2d   :  { %2355 = vsyncadd [#allocation11], 4294967280 }
  0x2e   :  { %2356 = dma.done.wait [#allocation8], 512  }
  0x2f   :  { %2357 = vsyncadd [#allocation8], 4294966784 }
  0x30   :  { %2358 = dma.done.wait [#allocation14], 13312  }
  0x31   :  { %2359 = vsyncadd [#allocation14], 4294953984 }
  0x32   :  { %2360 = dma.done.wait [#allocation17], 3072  }
  0x33   :  { %2361 = vsyncadd [#allocation17], 4294964224 }
  0x34   :  { %202 = sfence }
  0x35   :  { %s3022_s24 = sld [smem:[#allocation31_spill]]  ;;  %v2413_v2 = vmov 1   ;;  %v2414_v4 = vmov 0   ;;  %v235_v5 = vld [vmem:[#allocation12 + $0x18] sm:$0x3]  ;;  %vm243_vm0 = vcmask 1041408   ;;  %v205_v12 = vlaneseq }
  0x36   :  { %2034 = vset.pattern.permute.xlu1 %v2413_v2  ;;  %2032 = vset.pattern.permute.xlu0 %v2413_v2  ;;  %s3023_s29 = sld [smem:[#allocation32_spill]]  ;;  %v447_v6 = vld [vmem:[#allocation3] sm:$0xff]  ;;  %v476_v8 = vld [vmem:[#allocation7 + $0x8] sm:$0xff]  ;;  %v449_v9 = vld [vmem:[#allocation3 + $0x10] sm:$0xff]  ;;  %vm370_vm1 = vcmask 1044480   ;;  %vm357_vm3 = vcmask 39936  }
  0x37   :  { %2036 = vset.pattern.permute.xlu2 %v2414_v4  ;;  %1832 = vmatpush.msk.msra.mxu0 %vm243_vm0, %v235_v5  ;;  %v234_v10 = vld [vmem:[#allocation12 + $0x10] sm:$0xff]  ;;  %v220_v11 = vld [vmem:[#allocation12 + $0x8] sm:$0x3]  ;;  %v2605_v13 = vand.u32 127, %v205_v12  ;;  %v219_v15 = vld [vmem:[#allocation12] sm:$0xff]  ;;  %v2415_v17 = vmov 0.0  }
  0x38   :  { %1835 = vmatpush.msk.msra.mxu1 %vm243_vm0, %v220_v11  ;;  %1939 = vmatpush.msk.msra.mxu2 %vm243_vm0, %v220_v11  ;;  %v330_v16 = vld [vmem:[%s2999_s9] sm:$0x1f]  ;;  %v1846_v19 = vld [vmem:[%s2999_s9 + $0x8] sm:$0x1f]  ;;  %v477_v21 = vld [vmem:[#allocation7 + $0x10] sm:$0xff]  ;;  %vm236_vm4 = vcmask 80896  }
  0x39   :  { %262 = vmatpush.msra.mxu0 %v234_v10  ;;  %1852 = vmatpush.msk.msra.mxu3 %vm370_vm1, %v330_v16  ;;  %v475_v25 = vld [vmem:[#allocation7] sm:$0xff]  ;;  %v450_v26 = vld [vmem:[#allocation3 + $0x18] sm:$0xff]  ;;  %v448_v31 = vld [vmem:[#allocation3 + $0x8] sm:$0xff]  ;;  %s3024_s23 = sld [smem:[#allocation35_spill]] }
  0x3a   :  { %294 = vmatpush.msra.mxu1 %v219_v15  ;;  %1940 = vmatpush.msra.mxu2 %v219_v15  ;;  %v478_v41 = vld [vmem:[#allocation7 + $0x18] sm:$0xff]  ;;  %v652_v63 = vld [vmem:[#allocation13 + $0x50] sm:$0xff]  ;;  %v643_v10 = vld [vmem:[#allocation13 + $0x8] sm:$0xff] }
  0x3b   :  { %v204_v0 = vld [vmem:[%s3022_s24 + $0x8] sm:$0xff]  ;;  %v203_v1 = vld [vmem:[%s3022_s24] sm:$0xff]  ;;  %v653_v60 = vld [vmem:[#allocation13 + $0x58] sm:$0xff]  ;;  %s2374_s24 = smov 0  }
  0x3c   :  { %v302_v3 = vld [vmem:[%s3023_s29] sm:$0xff]  ;;  %225 = vperm.xlu1 %2034, %v204_v0   ;;  %222 = vperm.xlu0 %2032, %v203_v1   ;;  %v303_v7 = vld [vmem:[%s3023_s29 + $0x8] sm:$0xff]  ;;  %v304_v20 = vld [vmem:[%s3023_s29 + $0x10] sm:$0xff] }
  0x3d   :  { %307 = vperm.xlu2 %2036, %v302_v3   ;;  %1847 = vmatpush.msk.msrb.mxu2 %vm370_vm1, %v1846_v19  ;;  %v305_v27 = vld [vmem:[%s3023_s29 + $0x18] sm:$0xff] }
  0x3e   :  { %v649_v5 = vld [vmem:[#allocation13 + $0x38] sm:$0xff] }
  0x44   :  { %2035 = vset.pattern.permute.xlu1 %v2414_v4  ;;  %2033 = vset.pattern.permute.xlu0 %v2414_v4 }
  0x45   :  { %208 = vperm.xlu1 %2035, %v203_v1   ;;  %211 = vperm.xlu0 %2033, %v204_v0   ;;  %v651_v0 = vld [vmem:[#allocation13 + $0x48] sm:$0xff]  ;;  %v650_v1 = vld [vmem:[#allocation13 + $0x40] sm:$0xff] }
  0x46   :  { %2037 = vset.pattern.permute.xlu2 %v2413_v2 }
  0x47   :  { %332 = vperm.xlu2 %2037, %v302_v3  }
  0x4d   :  { %452 = vperm.xlu1 %2035, %v447_v6   ;;  %310 = vperm.xlu0 %2033, %v303_v7   ;;  %v645_v6 = vld [vmem:[#allocation13 + $0x18] sm:$0xff] }
  0x4e   :  { %719 = vmatpush.msrb.mxu3 %v645_v6 }
  0x4f   :  { %2038 = vset.pattern.permute.xlu2 %v2414_v4 }
  0x50   :  { %480 = vperm.xlu2 %2038, %v475_v25   ;;  %v646_v25 = vld [vmem:[#allocation13 + $0x20] sm:$0xff] }
  0x55   :  { %2039 = vset.pattern.permute.xlu1 %v2413_v2  ;;  %483 = vperm.xlu0 %2033, %v476_v8   ;;  %v644_v8 = vld [vmem:[#allocation13 + $0x10] sm:$0xff] }
  0x56   :  { %335 = vperm.xlu1 %2039, %v303_v7   ;;  %v648_v7 = vld [vmem:[#allocation13 + $0x30] sm:$0xff]  ;;  %720 = vmatpush.msrb.mxu3 %v644_v8 }
  0x58   :  { %455 = vperm.xlu2 %2038, %v448_v31   ;;  %721 = vmatpush.msrb.mxu3 %v643_v10 }
  0x5d   :  { %458 = vperm.xlu0 %2033, %v449_v9   ;;  %v647_v9 = vld [vmem:[#allocation13 + $0x28] sm:$0xff] }
  0x5e   :  { %2040 = vset.pattern.permute.xlu1 %v2414_v4 }
  0x5f   :  { %313 = vperm.xlu1 %2040, %v304_v20  }
  0x60   :  { %2041 = vset.pattern.permute.xlu2 %v2413_v2 }
  0x61   :  { %338 = vperm.xlu2 %2041, %v304_v20  }
  0x65   :  { %2043 = vset.pattern.permute.xlu0 %v2413_v2 }
  0x66   :  { %341 = vperm.xlu0 %2043, %v305_v27  }
  0x67   :  { %486 = vperm.xlu1 %2040, %v477_v21  }
  0x69   :  { %2042 = vset.pattern.permute.xlu2 %v2414_v4 }
  0x6a   :  { %316 = vperm.xlu2 %2042, %v305_v27  }
  0x6e   :  { %2044 = vset.pattern.permute.xlu0 %v2414_v4 }
  0x6f   :  { %461 = vperm.xlu1 %2040, %v450_v26   ;;  %v642_v26 = vld [vmem:[#allocation13] sm:$0xff] }
  0x70   :  { %722 = vmatpush.msrb.mxu3 %v642_v26 }
  0x72   :  { %489 = vperm.xlu2 %2042, %v478_v41   ;;  %v2739_v41 = vshrl.u32 %v205_v12, 7 }
  0x97   :  { %v308_v14 = vpop.permute.xlu2 %307 }
  0x98   :  { %vm318_vm2 = vcmp.eq.s32.totalorder %v308_v14, %v2605_v13 }
  0x99   :  { %v1838_v18 = vsel %vm318_vm2, 1.0, %v2415_v17  ;;  %vm559_vm2 = vcmask 130048  }
  0x9a   :  { %1853 = vmatmul.msk.f32.vlgmr.msra.gmra.mxu3 %vm357_vm3, %v1838_v18 }
  0xa1   :  { %v333_v34 = vpop.permute.xlu2 %332 }
  0xa2   :  { %vm343_vm9 = vcmp.eq.s32.totalorder %v333_v34, %v2605_v13 }
  0xa3   :  { %v1842_v37 = vsel %vm343_vm9, 1.0, %v2415_v17  ;;  %vm514_vm9 = vcmask 261120  }
  0xaa   :  { %v481_v42 = vpop.permute.xlu2 %480 }
  0xab   :  { %vm491_vm1 = vcmp.eq.s32.totalorder %v481_v42, %v2605_v13  ;;  %v2742_v42 = vadd.s32 8, %v2739_v41 }
  0xac   :  { %v2670_v62 = vsel %vm491_vm1, 1.0, %v2415_v17 }
  0xae   :  { %v223_v22 = vpop.permute.xlu0 %222  ;;  %v226_v23 = vpop.permute.xlu1 %225 }
  0xaf   :  { %vm227_vm5 = vcmp.eq.s32.totalorder %v223_v22, %v2605_v13  ;;  %vm228_vm6 = vcmp.eq.s32.totalorder %v226_v23, %v2605_v13 }
  0xb0   :  { %v1830_v24 = vsel %vm227_vm5, 1.0, %v2415_v17  ;;  %v1831_v28 = vsel %vm228_vm6, 1.0, %v2415_v17 }
  0xb1   :  { %1833 = vmatmul.msk.f32.vlgmr.msra.gmra.mxu0 %vm236_vm4, %v1830_v24 }
  0xb2   :  { %v456_v43 = vpop.permute.xlu2 %455 }
  0xb7   :  { %v209_v29 = vpop.permute.xlu1 %208  ;;  %v212_v30 = vpop.permute.xlu0 %211 }
  0xb8   :  { %vm213_vm7 = vcmp.eq.s32.totalorder %v209_v29, %v2605_v13  ;;  %vm214_vm8 = vcmp.eq.s32.totalorder %v212_v30, %v2605_v13 }
  0xb9   :  { %v1828_v32 = vsel %vm213_vm7, 1.0, %v2415_v17  ;;  %v1829_v33 = vsel %vm214_vm8, 1.0, %v2415_v17  ;;  %1834 = vmatmul.msk.f32.gmra.mxu0 %vm236_vm4, %v1831_v28 }
  0xba   :  { %1836 = vmatmul.msk.f32.vlgmr.msra.gmra.mxu1 %vm236_vm4, %v1828_v32  ;;  %1837 = vmatmul.msk.f32.vlgmr.msra.gmra.mxu2 %vm236_vm4, %v1829_v33  ;;  %vm464_vm4 = vcmp.eq.s32.totalorder %v456_v43, %v2605_v13  ;;  %v2046_v43 = vld [vmem:[%s3024_s23] ss:$0 sm:$0xff] }
  0xbb   :  { %v339_v47 = vpop.permute.xlu2 %338  ;;  %v2684_v3 = vsel %vm464_vm4, 1.0, %v2415_v17  ;;  %678 = vmatpush.msra.mxu2 %v649_v5 }
  0xbc   :  { %vm345_vm13 = vcmp.eq.s32.totalorder %v339_v47, %v2605_v13 }
  0xbd   :  { %v1844_v48 = vsel %vm345_vm13, 1.0, %v2415_v17  ;;  %679 = vmatpush.msra.mxu2 %v648_v7 }
  0xbf   :  { %v453_v35 = vpop.permute.xlu1 %452  ;;  %v311_v36 = vpop.permute.xlu0 %310  ;;  %680 = vmatpush.msra.mxu2 %v647_v9 }
  0xc0   :  { %vm319_vm10 = vcmp.eq.s32.totalorder %v311_v36, %v2605_v13  ;;  %vm463_vm0 = vcmp.eq.s32.totalorder %v453_v35, %v2605_v13 }
  0xc1   :  { %v1839_v38 = vsel %vm319_vm10, 1.0, %v2415_v17  ;;  %v2667_v61 = vsel %vm463_vm0, 1.0, %v2415_v17  ;;  %681 = vmatpush.msra.mxu2 %v646_v25  ;;  %vm509_vm10 = vcmp.eq.s32.totalorder %v2742_v42, %v2046_v43 }
  0xc2   :  { %1854 = vmatmul.msk.f32.gmra.mxu3 %vm357_vm3, %v1839_v38  ;;  %1848 = vmatmul.msk.f32.vlgmr.msrb.gmra.mxu2 %vm357_vm3, %v1842_v37 }
  0xc4   :  { %v317_v50 = vpop.permute.xlu2 %316 }
  0xc5   :  { %vm321_vm14 = vcmp.eq.s32.totalorder %v317_v50, %v2605_v13 }
  0xc6   :  { %v1841_v51 = vsel %vm321_vm14, 1.0, %v2415_v17 }
  0xc7   :  { %v484_v46 = vpop.permute.xlu0 %483 }
  0xc8   :  { %v336_v39 = vpop.permute.xlu1 %335 }
  0xc9   :  { %vm344_vm11 = vcmp.eq.s32.totalorder %v336_v39, %v2605_v13 }
  0xca   :  { %v1843_v40 = vsel %vm344_vm11, 1.0, %v2415_v17  ;;  %vm508_vm11 = vcmp.eq.s32.totalorder %v2739_v41, %v2046_v43 }
  0xcb   :  { %1849 = vmatmul.msk.f32.gmra.mxu2 %vm357_vm3, %v1843_v40 }
  0xcc   :  { %v490_v16 = vpop.permute.xlu2 %489 }
  0xcd   :  { %vm494_vm8 = vcmp.eq.s32.totalorder %v490_v16, %v2605_v13 }
  0xce   :  { %v2708_v19 = vsel %vm494_vm8, 1.0, %v2415_v17 }
  0xcf   :  { %v459_v49 = vpop.permute.xlu0 %458 }
  0xd0   :  { %vm465_vm5 = vcmp.eq.s32.totalorder %v459_v49, %v2605_v13 }
  0xd1   :  { %v314_v44 = vpop.permute.xlu1 %313  ;;  %v2693_v11 = vsel %vm465_vm5, 1.0, %v2415_v17 }
  0xd2   :  { %vm320_vm12 = vcmp.eq.s32.totalorder %v314_v44, %v2605_v13  ;;  %v2750_v44 = vsel %vm509_vm10, 1.0, %v2415_v17 }
  0xd3   :  { %v1840_v45 = vsel %vm320_vm12, 1.0, %v2415_v17  ;;  %1850 = vmatmul.msk.f32.gmra.mxu2 %vm357_vm3, %v1844_v48  ;;  %v518_v12 = vsel %vm514_vm9, %v2750_v44, 0.0 }
  0xd4   :  { %1855 = vmatmul.msk.f32.gmra.mxu3 %vm357_vm3, %v1840_v45  ;;  %v2753_v45 = vsel %vm508_vm11, 1.0, %v2415_v17  ;;  %519 = vadd.xlane.f32.xlu2 %v518_v12 }
  0xd8   :  { %v342_v52 = vpop.permute.xlu0 %341 }
  0xd9   :  { %vm346_vm15 = vcmp.eq.s32.totalorder %v342_v52, %v2605_v13  ;;  %v487_v4 = vpop.permute.xlu1 %486 }
  0xda   :  { %v1845_v53 = vsel %vm346_vm15, 1.0, %v2415_v17  ;;  %vm493_vm6 = vcmp.eq.s32.totalorder %v487_v4, %v2605_v13 }
  0xdb   :  { %1851 = vmatmul.msk.f32.gmra.mxu2 %vm357_vm3, %v1845_v53  ;;  %v2696_v14 = vsel %vm493_vm6, 1.0, %v2415_v17 }
  0xdc   :  { %1856 = vmatmul.msk.f32.gmra.mxu3 %vm357_vm3, %v1841_v51  ;;  %vm492_vm3 = vcmp.eq.s32.totalorder %v484_v46, %v2605_v13  ;;  %v515_v46 = vsel %vm514_vm9, %v2753_v45, 0.0  ;;  %v2045_v51 = vld [vmem:[%s3001_s11] ss:$0 sm:$0xff] }
  0xdd   :  { %v2681_v2 = vsel %vm492_vm3, 1.0, %v2415_v17  ;;  %516 = vadd.xlane.f32.xlu1 %v515_v46 }
  0xe1   :  { %v462_v15 = vpop.permute.xlu1 %461 }
  0xe2   :  { %vm466_vm7 = vcmp.eq.s32.totalorder %v462_v15, %v2605_v13 }
  0xe3   :  { %v2705_v18 = vsel %vm466_vm7, 1.0, %v2415_v17 }
 0x11d   :  { %v435_v21 = vpop.f32.mrf.mxu3 }
 0x12e   :  { %v264_v54 = vpop.f32.mrf.mxu0 }
 0x136   :  { %v267_v55 = vpop.f32.mrf.mxu0 }
 0x137   :  { %v296_v56 = vpop.f32.mrf.mxu1 }
 0x138   :  { %v2662_v59 = vadd.f32 %v296_v56, %v264_v54 }
 0x13d   :  { %v299_v57 = vpop.f32.mrf.mxu2 }
 0x13e   :  { %v2658_v58 = vadd.f32 %v299_v57, %v267_v55 }
 0x140   :  { %586 = vmatpush.msrb.mxu0 %v2658_v58  ;;  %627 = vmatpush.msrb.mxu1 %v2658_v58 }
 0x142   :  { %587 = vmatpush.msrb.mxu0 %v2662_v59  ;;  %628 = vmatpush.msrb.mxu1 %v2662_v59 }
 0x143   :  { %1867 = vmatmul.msk.f32.vlgmr.msrb.gmra.mxu0 %vm559_vm2, %v2667_v61  ;;  %1871 = vmatmul.msk.f32.vlgmr.msrb.gmra.mxu1 %vm559_vm2, %v2670_v62 }
 0x144   :  { %760 = vmatpush.msra.mxu0 %v653_v60 }
 0x145   :  { %v391_v20 = vpop.f32.mrf.mxu2  ;;  %v438_v23 = vpop.f32.mrf.mxu3 }
 0x146   :  { %761 = vmatpush.msra.mxu0 %v652_v63  ;;  %v2714_v22 = vadd.f32 %v435_v21, %v391_v20 }
 0x147   :  { %v2770_v21 = vpop.xlane.xlu2 %519 }
 0x148   :  { %762 = vmatpush.msra.mxu0 %v651_v0 }
 0x14a   :  { %763 = vmatpush.msra.mxu0 %v650_v1 }
 0x14b   :  { %1868 = vmatmul.msk.f32.gmra.mxu0 %vm559_vm2, %v2684_v3  ;;  %1872 = vmatmul.msk.f32.gmra.mxu1 %vm559_vm2, %v2681_v2 }
 0x14e   :  { %v394_v13 = vpop.f32.mrf.mxu2 }
 0x14f   :  { %v2718_v24 = vadd.f32 %v438_v23, %v394_v13  ;;  %v522_v23 = vadd.f32 1.0, %v2770_v21 }
 0x150   :  { %v2772_v13 = vpop.xlane.xlu1 %516 }
 0x151   :  { %v521_v25 = vadd.f32 1.0, %v2772_v13  ;;  %2047 = vlog2.f32 %v522_v23 }
 0x153   :  { %1869 = vmatmul.msk.f32.gmra.mxu0 %vm559_vm2, %v2693_v11  ;;  %1873 = vmatmul.msk.f32.gmra.mxu1 %vm559_vm2, %v2696_v14  ;;  %2049 = vlog2.f32 %v521_v25 }
 0x156   :  { %v397_v27 = vpop.f32.mrf.mxu2 }
 0x157   :  { %v441_v28 = vpop.f32.mrf.mxu3  ;;  %v2048_v26 = vpop.eup %2047 }
 0x158   :  { %v2722_v29 = vadd.f32 %v441_v28, %v397_v27  ;;  %v2776_v27 = vmul.f32 0.6931472, %v2048_v26 }
 0x159   :  { %v2050_v28 = vpop.eup %2049 }
 0x15b   :  { %1870 = vmatmul.msk.f32.gmra.mxu0 %vm559_vm2, %v2705_v18  ;;  %1874 = vmatmul.msk.f32.gmra.mxu1 %vm559_vm2, %v2708_v19 }
 0x15e   :  { %v400_v31 = vpop.f32.mrf.mxu2 }
 0x15f   :  { %v444_v30 = vpop.f32.mrf.mxu3 }
 0x160   :  { %v2726_v32 = vadd.f32 %v444_v30, %v400_v31  ;;  %v528_v30 = vmax.f32 %v2776_v27, 1e-08  ;;  %v2779_v31 = vmul.f32 0.6931472, %v2050_v28 }
 0x162   :  { %2051 = vrcp.f32 %v528_v30  ;;  %vm549_vm12 = vweird.f32 %v528_v30 }
 0x163   :  { %1883 = vmatmul.msk.f32.vlgmr.msra.gmra.mxu0 %vm514_vm9, %v2714_v22 }
 0x16b   :  { %1884 = vmatmul.msk.f32.gmra.mxu0 %vm514_vm9, %v2718_v24 }
 0x173   :  { %1885 = vmatmul.msk.f32.gmra.mxu0 %vm514_vm9, %v2722_v29 }
 0x17b   :  { %1886 = vmatmul.msk.f32.gmra.mxu0 %vm514_vm9, %v2726_v32 }
 0x1c0   :  { %v589_v33 = vpop.f32.mrf.mxu0  ;;  %v630_v34 = vpop.f32.mrf.mxu1 }
 0x1c1   :  { %1875 = vmatmul.msk.f32.vlgmr.msra.gmra.mxu2 %vm514_vm9, %v630_v34  ;;  %1879 = vmatmul.msk.f32.vlgmr.msrb.gmra.mxu3 %vm514_vm9, %v589_v33  ;;  %v527_v33 = vmax.f32 %v2779_v31, 1e-08  ;;  %v2052_v34 = vpop.eup %2051 }
 0x1c2   :  { %vm550_vm13 = vweird.f32 %v2052_v34 }
 0x1c3   :  { %2053 = vrcp.f32 %v527_v33  ;;  %v540_v46 = vand.u32 2147483648, %v527_v33  ;;  %vm551_vm14 = vmor %vm549_vm12, %vm550_vm13  ;;  %vm534_vm15 = vweird.f32 %v527_v33 }
 0x1c8   :  { %v592_v35 = vpop.f32.mrf.mxu0  ;;  %v633_v36 = vpop.f32.mrf.mxu1 }
 0x1c9   :  { %1876 = vmatmul.msk.f32.gmra.mxu2 %vm514_vm9, %v633_v36  ;;  %1880 = vmatmul.msk.f32.gmra.mxu3 %vm514_vm9, %v592_v35  ;;  %v545_v35 = vmul.f32 %v2052_v34, %v528_v30  ;;  %v555_v36 = vand.u32 2147483648, %v528_v30 }
 0x1cb   :  { %v556_v12 = vor.u32 1.1754944e-38, %v555_v36 }
 0x1d0   :  { %v595_v37 = vpop.f32.mrf.mxu0  ;;  %v636_v38 = vpop.f32.mrf.mxu1 }
 0x1d1   :  { %1877 = vmatmul.msk.f32.gmra.mxu2 %vm514_vm9, %v636_v38  ;;  %1881 = vmatmul.msk.f32.gmra.mxu3 %vm514_vm9, %v595_v37  ;;  %v2054_v37 = vpop.eup %2053  ;;  %v546_v38 = vsub.f32 1.0, %v545_v35 }
 0x1d2   :  { %vm535_vm0 = vweird.f32 %v2054_v37 }
 0x1d3   :  { %v547_v43 = vmul.f32 %v2052_v34, %v546_v38  ;;  %vm536_vm3 = vmor %vm534_vm15, %vm535_vm0 }
 0x1d8   :  { %v598_v39 = vpop.f32.mrf.mxu0  ;;  %v639_v40 = vpop.f32.mrf.mxu1 }
 0x1d9   :  { %1878 = vmatmul.msk.f32.gmra.mxu2 %vm514_vm9, %v639_v40  ;;  %1882 = vmatmul.msk.f32.gmra.mxu3 %vm514_vm9, %v598_v39  ;;  %v553_v39 = vand.u32 2147483647, %v528_v30  ;;  %v530_v40 = vmul.f32 %v2054_v37, %v527_v33 }
 0x1db   :  { %vm554_vm1 = vcmp.eq.f32.partialorder %v553_v39, 8.507059e+37  ;;  %v2366_v39 = vmov -3e+38  }
 0x1e0   :  { %v765_v47 = vpop.f32.mrf.mxu0 }
 0x1e8   :  { %v768_v54 = vpop.f32.mrf.mxu0 }
 0x1f0   :  { %v771_v0 = vpop.f32.mrf.mxu0 }
 0x1f8   :  { %v774_v15 = vpop.f32.mrf.mxu0 }
 0x244   :  { %v683_v48 = vpop.f32.mrf.mxu2  ;;  %v724_v49 = vpop.f32.mrf.mxu3 }
 0x245   :  { %v725_v50 = vadd.f32 %v724_v49, %v683_v48  ;;  %v538_v48 = vand.u32 2147483647, %v527_v33  ;;  %v548_v49 = vadd.f32 %v2052_v34, %v547_v43 }
 0x247   :  { %v777_v52 = vadd.f32 %v765_v47, %v725_v50  ;;  %v531_v47 = vsub.f32 1.0, %v530_v40  ;;  %vm539_vm4 = vcmp.eq.f32.partialorder %v538_v48, 8.507059e+37  ;;  %v2370_v40 = vmov -3e+38  }
 0x249   :  { %v785_v53 = vadd.f32 %v2045_v51, %v777_v52  ;;  %v532_v50 = vmul.f32 %v2054_v37, %v531_v47  ;;  %v541_v52 = vor.u32 1.1754944e-38, %v540_v46 }
 0x24b   :  { %789 = vst.msk [vmem:[#allocation2] sm:$0xff] %vm514_vm9, %v785_v53 }
 0x24c   :  { %v686_v55 = vpop.f32.mrf.mxu2  ;;  %v727_v56 = vpop.f32.mrf.mxu3 }
 0x24d   :  { %v728_v57 = vadd.f32 %v727_v56, %v686_v55 }
 0x24f   :  { %v778_v60 = vadd.f32 %v768_v54, %v728_v57  ;;  %v533_v54 = vadd.f32 %v2054_v37, %v532_v50  ;;  %v822_v57 = vmax.f32 %v2772_v13, 1.0 }
 0x251   :  { %v786_v63 = vadd.f32 %v2045_v51, %v778_v60  ;;  %v537_v55 = vsel %vm536_vm3, %v2054_v37, %v533_v54  ;;  %2055 = vrcp.f32 %v822_v57  ;;  %v823_v60 = vmax.f32 %v2770_v21, 1.0 }
 0x252   :  { %v2784_v56 = vsel %vm539_vm4, %v541_v52, %v537_v55  ;;  %vm829_vm5 = vweird.f32 %v822_v57 }
 0x253   :  { %790 = vst.msk [vmem:[#allocation2 + $0x8] sm:$0xff] %vm514_vm9, %v786_v63  ;;  %2057 = vrcp.f32 %v823_v60  ;;  %vm844_vm10 = vweird.f32 %v823_v60  ;;  %v850_v26 = vand.u32 2147483648, %v823_v60  ;;  %v848_v33 = vand.u32 2147483647, %v823_v60 }
 0x254   :  { %v689_v1 = vpop.f32.mrf.mxu2  ;;  %v730_v4 = vpop.f32.mrf.mxu3 }
 0x255   :  { %v731_v5 = vadd.f32 %v730_v4, %v689_v1  ;;  %vm849_vm13 = vcmp.eq.f32.partialorder %v848_v33, 8.507059e+37 }
 0x257   :  { %v779_v6 = vadd.f32 %v771_v0, %v731_v5 }
 0x259   :  { %v787_v7 = vadd.f32 %v2045_v51, %v779_v6 }
 0x25b   :  { %791 = vst.msk [vmem:[#allocation2 + $0x10] sm:$0xff] %vm514_vm9, %v787_v7 }
 0x25c   :  { %v692_v8 = vpop.f32.mrf.mxu2  ;;  %v733_v9 = vpop.f32.mrf.mxu3 }
 0x25d   :  { %v734_v10 = vadd.f32 %v733_v9, %v692_v8  ;;  %v833_v9 = vand.u32 2147483647, %v822_v57 }
 0x25f   :  { %v780_v16 = vadd.f32 %v774_v15, %v734_v10  ;;  %vm834_vm8 = vcmp.eq.f32.partialorder %v833_v9, 8.507059e+37 }
 0x261   :  { %v788_v20 = vadd.f32 %v2045_v51, %v780_v16  ;;  %v552_v51 = vsel %vm551_vm14, %v2052_v34, %v548_v49  ;;  %v851_v34 = vor.u32 1.1754944e-38, %v850_v26 }
 0x263   :  { %792 = vst.msk [vmem:[#allocation2 + $0x18] sm:$0xff] %vm514_vm9, %v788_v20  ;;  %811 = vmatpush.msra.mxu1 %v788_v20 }
 0x265   :  { %812 = vmatpush.msra.mxu1 %v787_v7  ;;  %v835_v7 = vand.u32 2147483648, %v822_v57 }
 0x267   :  { %813 = vmatpush.msra.mxu1 %v786_v63  ;;  %v2056_v63 = vpop.eup %2055  ;;  %v836_v15 = vor.u32 1.1754944e-38, %v835_v7 }
 0x268   :  { %v825_v0 = vmul.f32 %v2056_v63, %v822_v57  ;;  %v2058_v4 = vpop.eup %2057  ;;  %vm830_vm6 = vweird.f32 %v2056_v63 }
 0x269   :  { %814 = vmatpush.msra.mxu1 %v785_v53  ;;  %v2782_v53 = vsel %vm554_vm1, %v556_v12, %v552_v51  ;;  %v840_v6 = vmul.f32 %v2058_v4, %v823_v60  ;;  %vm831_vm7 = vmor %vm829_vm5, %vm830_vm6  ;;  %vm845_vm11 = vweird.f32 %v2058_v4 }
 0x26a   :  { %1887 = vmatmul.msk.f32.vlgmr.msra.gmra.mxu1 %vm514_vm9, %v2753_v45  ;;  %v826_v1 = vsub.f32 1.0, %v825_v0  ;;  %vm846_vm12 = vmor %vm844_vm10, %vm845_vm11 }
 0x26b   :  { %v841_v10 = vsub.f32 1.0, %v840_v6 }
 0x26c   :  { %v827_v5 = vmul.f32 %v2056_v63, %v826_v1 }
 0x26d   :  { %v842_v20 = vmul.f32 %v2058_v4, %v841_v10 }
 0x26e   :  { %v828_v8 = vadd.f32 %v2056_v63, %v827_v5 }
 0x26f   :  { %v843_v30 = vadd.f32 %v2058_v4, %v842_v20 }
 0x270   :  { %v832_v16 = vsel %vm831_vm7, %v2056_v63, %v828_v8 }
 0x271   :  { %v2790_v25 = vsel %vm834_vm8, %v836_v15, %v832_v16  ;;  %v847_v35 = vsel %vm846_vm12, %v2058_v4, %v843_v30 }
 0x272   :  { %1888 = vmatmul.msk.f32.gmra.mxu1 %vm514_vm9, %v2750_v44  ;;  %v2798_v37 = vsel %vm849_vm13, %v851_v34, %v847_v35 }
 0x2e7   :  { %v2788_v23 = vpop.f32.mrf.mxu1 }
 0x2e8   :  { %v2794_v28 = vmul.f32 %v2790_v25, %v2788_v23 }
 0x2ef   :  { %v2796_v36 = vpop.f32.mrf.mxu1 }
 0x2f0   :  { %v2802_v38 = vmul.f32 %v2798_v37, %v2796_v36 }
 0x2f1 LB: > { %s862_s10 = sld [smem:[#allocation9 + %s2376_s24]]  ;;  %s863_s2 = scalar_lea.vmem [#allocation2], %s2376_s24  ;;  %s2376_s24 = sphi %s2374_s24, %s859_s24   ;;  %v2372_v40 = vphi %v2370_v40, %v2371_v40   ;;  %v2368_v39 = vphi %v2366_v39, %v2367_v39  }
 0x2f2   : > { %v2059_v43 = vld [vmem:[%s863_s2] ss:$0 sm:$0xff]  ;;  %s859_s24 = sadd.s32 1, %s2376_s24  }
 0x2f3   : > { %v869_v12 = vmax.f32 %v2372_v40, %v2059_v43  ;;  %v870_v46 = vmax.f32 %v2368_v39, %v2059_v43  ;;  %p856_p0 = scmp.ge.s32.totalorder %s859_s24, 32  }
 0x2f4   :  { %vm877_vm0 = vcmp.gt.f32.partialorder (%p856_p0), %v2772_v13, 0.0  ;;  %vm878_vm1 = vcmp.gt.f32.partialorder (%p856_p0), %v2770_v21, 0.0  ;;  %v929_v50 = vld [vmem:[#allocation15 + $0xb8] sm:$0xff] (%p856_p0)  ;;  %v928_v57 = vld [vmem:[#allocation15 + $0xb0] sm:$0xff] (%p856_p0)  ;;  %s2416_s25 = smov (%p856_p0), 32   ;;  %v927_v0 = vld [vmem:[#allocation15 + $0xa8] sm:$0xff] (%p856_p0) }
 0x2f5   :  { %v917_v51 = vld [vmem:[#allocation15 + $0x58] sm:$0xff] (%p856_p0)  ;;  %957 = vmatpush.msrb.mxu2 (%p856_p0), %v929_v50  ;;  %v916_v60 = vld [vmem:[#allocation15 + $0x50] sm:$0xff] (%p856_p0)  ;;  %v915_v1 = vld [vmem:[#allocation15 + $0x48] sm:$0xff] (%p856_p0)  ;;  %s2417_s26 = smov (%p856_p0), 64   ;;  %vm903_vm3 = vcmask (%p856_p0), 523264   ;;  %vm946_vm4 = vcmask (%p856_p0), 785408  }
 0x2f6   :  { %858 = sbr.rel (!%p856_p0) target bundleno = 753 (0x2f1), region = 176  ;;  %982 = vmatpush.msra.mxu3 (%p856_p0), %v917_v51  ;;  %v941_v55 = vld [vmem:[#allocation15 + $0x118] sm:$0xff] (%p856_p0)  ;;  %v940_v63 = vld [vmem:[#allocation15 + $0x110] sm:$0xff] (%p856_p0)  ;;  %v939_v4 = vld [vmem:[#allocation15 + $0x108] sm:$0xff] (%p856_p0) }
 0x2f7   : > { %v865_v47 = vstv %s862_s10  ;;  %1005 = vmatpush.msrb.mxu1 (%p856_p0), %v941_v55  ;;  %958 = vmatpush.msrb.mxu2 (%p856_p0), %v928_v57  ;;  %v926_v5 = vld [vmem:[#allocation15 + $0xa0] sm:$0xff] (%p856_p0)  ;;  %v925_v8 = vld [vmem:[#allocation15 + $0x98] sm:$0xff] (%p856_p0)  ;;  %v924_v15 = vld [vmem:[#allocation15 + $0x90] sm:$0xff] (%p856_p0) }
 0x2f8   : > { %vm866_vm14 = vcmp.eq.s32.totalorder %v2739_v41, %v865_v47  ;;  %vm867_vm15 = vcmp.eq.s32.totalorder %v2742_v42, %v865_v47  ;;  %983 = vmatpush.msra.mxu3 (%p856_p0), %v916_v60  ;;  %v914_v6 = vld [vmem:[#allocation15 + $0x40] sm:$0xff] (%p856_p0)  ;;  %v913_v9 = vld [vmem:[#allocation15 + $0x38] sm:$0xff] (%p856_p0)  ;;  %v912_v16 = vld [vmem:[#allocation15 + $0x30] sm:$0xff] (%p856_p0) }
 0x2f9   : > { %v875_v48 = vsel %vm866_vm14, %v869_v12, %v2372_v40   ;;  %v876_v49 = vsel %vm867_vm15, %v870_v46, %v2368_v39   ;;  %1006 = vmatpush.msrb.mxu1 (%p856_p0), %v940_v63  ;;  %959 = vmatpush.msrb.mxu2 (%p856_p0), %v927_v0  ;;  %v938_v7 = vld [vmem:[#allocation15 + $0x100] sm:$0xff] (%p856_p0)  ;;  %v937_v10 = vld [vmem:[#allocation15 + $0xf8] sm:$0xff] (%p856_p0)  ;;  %v936_v20 = vld [vmem:[#allocation15 + $0xf0] sm:$0xff] (%p856_p0) }
 0x2fa   : > { %v2367_v39 = vmov %v876_v49   ;;  %v2371_v40 = vmov %v875_v48   ;;  %v883_v52 = vsel (%p856_p0), %vm877_vm0, %v875_v48, 0.0  ;;  %v884_v54 = vsel (%p856_p0), %vm878_vm1, %v876_v49, 0.0  ;;  %984 = vmatpush.msra.mxu3 (%p856_p0), %v915_v1  ;;  %v923_v26 = vld [vmem:[#allocation15 + $0x88] sm:$0xff] (%p856_p0)  ;;  %v922_v34 = vld [vmem:[#allocation15 + $0x80] sm:$0xff] (%p856_p0)  ;;  %v920_v43 = vld [vmem:[#allocation15 + $0x70] sm:$0xff] (%p856_p0) }
 0x2fb   :  { %887 = vrot.lane.b32.xlu0 %v883_v52, %s2416_s25  ;;  %889 = vrot.lane.b32.xlu1 %v884_v54, %s2416_s25  ;;  %v911_v30 = vld [vmem:[#allocation15 + $0x28] sm:$0xff]  ;;  %v910_v35 = vld [vmem:[#allocation15 + $0x20] sm:$0xff]  ;;  %v933_v40 = vld [vmem:[#allocation15 + $0xd8] sm:$0xff] }
 0x2fc   :  { %1007 = vmatpush.msrb.mxu1 %v939_v4  ;;  %960 = vmatpush.msrb.mxu2 %v926_v5  ;;  %v935_v33 = vld [vmem:[#allocation15 + $0xe8] sm:$0xff]  ;;  %v934_v39 = vld [vmem:[#allocation15 + $0xe0] sm:$0xff]  ;;  %v908_v12 = vld [vmem:[#allocation15 + $0x10] sm:$0xff] }
 0x2fd   :  { %985 = vmatpush.msra.mxu3 %v914_v6  ;;  %v932_v46 = vld [vmem:[#allocation15 + $0xd0] sm:$0xff]  ;;  %v919_v47 = vld [vmem:[#allocation15 + $0x68] sm:$0xff]  ;;  %v918_v50 = vld [vmem:[#allocation15 + $0x60] sm:$0xff] }
 0x2fe   :  { %1008 = vmatpush.msrb.mxu1 %v938_v7  ;;  %961 = vmatpush.msrb.mxu2 %v925_v8  ;;  %v907_v48 = vld [vmem:[#allocation15 + $0x8] sm:$0xff]  ;;  %v906_v51 = vld [vmem:[#allocation15] sm:$0xff]  ;;  %v945_v54 = vld [vmem:[#allocation15 + $0x138] sm:$0xff] }
 0x2ff   :  { %986 = vmatpush.msra.mxu3 %v913_v9  ;;  %v931_v49 = vld [vmem:[#allocation15 + $0xc8] sm:$0xff]  ;;  %v930_v52 = vld [vmem:[#allocation15 + $0xc0] sm:$0xff]  ;;  %v944_v55 = vld [vmem:[#allocation15 + $0x130] sm:$0xff] }
 0x300   :  { %1009 = vmatpush.msrb.mxu1 %v937_v10  ;;  %962 = vmatpush.msrb.mxu2 %v924_v15  ;;  %v943_v57 = vld [vmem:[#allocation15 + $0x128] sm:$0xff]  ;;  %v942_v60 = vld [vmem:[#allocation15 + $0x120] sm:$0xff]  ;;  %v1069_v9 = vld [vmem:[#allocation16 + $0x10] sm:$0xff] }
 0x301   :  { %987 = vmatpush.msra.mxu3 %v912_v16  ;;  %v1067_v10 = vld [vmem:[#allocation16] sm:$0xff] }
 0x302   :  { %1010 = vmatpush.msrb.mxu1 %v936_v20  ;;  %963 = vmatpush.msrb.mxu2 %v923_v26 }
 0x303   :  { %895 = vrot.lane.b32.xlu0 %v2788_v23, %s2417_s26  ;;  %897 = vrot.lane.b32.xlu1 %v2796_v36, %s2417_s26  ;;  %v921_v23 = vld [vmem:[#allocation15 + $0x78] sm:$0xff] }
 0x304   :  { %988 = vmatpush.msra.mxu3 %v911_v30  ;;  %1011 = vmatpush.msrb.mxu1 %v935_v33  ;;  %v909_v36 = vld [vmem:[#allocation15 + $0x18] sm:$0xff] }
 0x305   :  { %964 = vmatpush.msrb.mxu2 %v922_v34 }
 0x306   :  { %989 = vmatpush.msra.mxu3 %v910_v35  ;;  %1012 = vmatpush.msrb.mxu1 %v934_v39 }
 0x307   :  { %965 = vmatpush.msrb.mxu2 %v921_v23  ;;  %v2060_v23 = vld [vmem:[%s3003_s13] ss:$0 sm:$0xff] }
 0x308   :  { %990 = vmatpush.msra.mxu3 %v909_v36  ;;  %1013 = vmatpush.msrb.mxu1 %v933_v40 }
 0x309   :  { %966 = vmatpush.msrb.mxu2 %v920_v43 }
 0x30a   :  { %991 = vmatpush.msra.mxu3 %v908_v12  ;;  %1014 = vmatpush.msrb.mxu1 %v932_v46 }
 0x30b   :  { %967 = vmatpush.msrb.mxu2 %v919_v47 }
 0x30c   :  { %992 = vmatpush.msra.mxu3 %v907_v48  ;;  %1015 = vmatpush.msrb.mxu1 %v931_v49 }
 0x30d   :  { %968 = vmatpush.msrb.mxu2 %v918_v50 }
 0x30e   :  { %993 = vmatpush.msra.mxu3 %v906_v51  ;;  %1016 = vmatpush.msrb.mxu1 %v930_v52 }
 0x30f   :  { %1046 = vmatpush.msra.mxu2 %v945_v54 }
 0x311   :  { %1047 = vmatpush.msra.mxu2 %v944_v55 }
 0x313   :  { %1048 = vmatpush.msra.mxu2 %v943_v57 }
 0x315   :  { %1049 = vmatpush.msra.mxu2 %v942_v60  ;;  %v2061_v60 = vld [vmem:[%s3005_s15] ss:$0 sm:$0xff] }
 0x36d   :  { %v888_v63 = vpop.permute.xlu0 %887  ;;  %v890_v0 = vpop.permute.xlu1 %889 }
 0x36e   :  { %v901_v1 = vsel %vm514_vm9, %v2794_v28, %v888_v63  ;;  %v902_v6 = vsel %vm514_vm9, %v2802_v38, %v890_v0  ;;  %v1070_v28 = vld [vmem:[#allocation16 + $0x18] sm:$0xff]  ;;  %v1068_v38 = vld [vmem:[#allocation16 + $0x8] sm:$0xff] }
 0x36f   :  { %1093 = vmatpush.msrb.mxu3 %v1070_v28  ;;  %v1172_v0 = vld [vmem:[#allocation13 + $0x98] sm:$0xff]  ;;  %v1170_v28 = vld [vmem:[#allocation13 + $0x88] sm:$0xff] }
 0x371   :  { %1094 = vmatpush.msrb.mxu3 %v1069_v9  ;;  %v1166_v9 = vld [vmem:[#allocation13 + $0x68] sm:$0xff] }
 0x373   :  { %1095 = vmatpush.msrb.mxu3 %v1068_v38 }
 0x375   :  { %v896_v4 = vpop.permute.xlu0 %895  ;;  %v898_v7 = vpop.permute.xlu1 %897  ;;  %1096 = vmatpush.msrb.mxu3 %v1067_v10 }
 0x376   :  { %v904_v5 = vsel %vm903_vm3, %v901_v1, %v896_v4  ;;  %v905_v8 = vsel %vm903_vm3, %v902_v6, %v898_v7  ;;  %v1168_v1 = vld [vmem:[#allocation13 + $0x78] sm:$0xff]  ;;  %v1171_v4 = vld [vmem:[#allocation13 + $0x90] sm:$0xff] }
 0x377   :  { %1889 = vmatmul.msk.f32.vlgmr.msrb.gmra.mxu2 %vm946_vm4, %v904_v5  ;;  %1891 = vmatmul.msk.f32.vlgmr.msra.gmra.mxu3 %vm946_vm4, %v904_v5  ;;  %v1167_v7 = vld [vmem:[#allocation13 + $0x70] sm:$0xff] }
 0x378   :  { %1893 = vmatmul.msk.f32.vlgmr.msrb.gmra.mxu1 %vm946_vm4, %v904_v5  ;;  %1201 = vmatpush.msrb.mxu2 %v1172_v0 }
 0x379   :  { %1242 = vmatpush.msra.mxu3 %v1168_v1 }
 0x37a   :  { %1202 = vmatpush.msrb.mxu2 %v1171_v4  ;;  %v2378_v4 = vmov -3e+38  }
 0x37b   :  { %1243 = vmatpush.msra.mxu3 %v1167_v7 }
 0x37c   :  { %1203 = vmatpush.msrb.mxu2 %v1170_v28 }
 0x37d   :  { %1244 = vmatpush.msra.mxu3 %v1166_v9 }
 0x37f   :  { %1890 = vmatmul.msk.f32.gmra.mxu2 %vm946_vm4, %v905_v8  ;;  %1892 = vmatmul.msk.f32.gmra.mxu3 %vm946_vm4, %v905_v8 }
 0x380   :  { %1894 = vmatmul.msk.f32.gmra.mxu1 %vm946_vm4, %v905_v8 }
 0x387   :  { %1895 = vmatmul.msk.f32.vlgmr.msra.gmra.mxu2 %vm514_vm9, %v2662_v59 }
 0x38f   :  { %1896 = vmatmul.msk.f32.gmra.mxu2 %vm514_vm9, %v2658_v58 }
 0x3f5   :  { %v1018_v16 = vpop.f32.mrf.mxu1 }
 0x3f6   :  { %v1024_v34 = vmul.f32 %v1018_v16, %v2784_v56 }
 0x3fa   :  { %v970_v15 = vpop.f32.mrf.mxu2  ;;  %v995_v26 = vpop.f32.mrf.mxu3 }
 0x3fb   :  { %v976_v20 = vmul.f32 %v970_v15, %v2779_v31 }
 0x3fd   :  { %v996_v33 = vadd.f32 %v995_v26, %v976_v20  ;;  %v1021_v43 = vpop.f32.mrf.mxu1  ;;  %v2062_v26 = vld [vmem:[%s3001_s11 + $0x1] ss:$0 sm:$0xff]  ;;  %s2386_s11 = smov 0  }
 0x3fe   :  { %v1025_v48 = vmul.f32 %v1021_v43, %v2782_v53 }
 0x3ff   :  { %v1026_v39 = vadd.f32 %v1024_v34, %v996_v33 }
 0x402   :  { %v973_v30 = vpop.f32.mrf.mxu2  ;;  %v998_v12 = vpop.f32.mrf.mxu3 }
 0x403   :  { %v977_v35 = vmul.f32 %v973_v30, %v2776_v27 }
 0x405   :  { %v999_v46 = vadd.f32 %v998_v12, %v977_v35 }
 0x407   :  { %v1027_v50 = vadd.f32 %v1025_v48, %v999_v46 }
 0x40a   :  { %v1051_v36 = vpop.f32.mrf.mxu2 }
 0x40b   :  { %v1057_v40 = vadd.f32 %v1051_v36, %v1026_v39 }
 0x40d   :  { %v1063_v47 = vadd.f32 %v2060_v23, %v1057_v40 }
 0x40f   :  { %v1065_v49 = vmax.f32 %v1063_v47, 0.0 }
 0x411   :  { %1897 = vmatmul.msk.f32.vlgmr.msrb.gmra.mxu3 %vm514_vm9, %v1065_v49 }
 0x412   :  { %v1054_v51 = vpop.f32.mrf.mxu2 }
 0x413   :  { %v1058_v52 = vadd.f32 %v1054_v51, %v1027_v50 }
 0x415   :  { %v1064_v54 = vadd.f32 %v2060_v23, %v1058_v52 }
 0x417   :  { %v1066_v55 = vmax.f32 %v1064_v54, 0.0 }
 0x419   :  { %1898 = vmatmul.msk.f32.gmra.mxu3 %vm514_vm9, %v1066_v55 }
 0x494   :  { %v1098_v57 = vpop.f32.mrf.mxu3 }
 0x495   :  { %v1099_v5 = vadd.f32 %v2061_v60, %v1098_v57 }
 0x497   :  { %v2850_v38 = vadd.f32 %v1099_v5, %v2662_v59  ;;  %v1165_v59 = vld [vmem:[#allocation13 + $0x60] sm:$0xff]  ;;  %v2382_v5 = vmov -3e+38  }
 0x498   :  { %1245 = vmatpush.msra.mxu3 %v1165_v59 }
 0x49c   :  { %v1101_v63 = vpop.f32.mrf.mxu3 }
 0x49d   :  { %v1102_v6 = vadd.f32 %v2061_v60, %v1101_v63 }
 0x49f   :  { %v2847_v8 = vadd.f32 %v1102_v6, %v2658_v58  ;;  %v1169_v58 = vld [vmem:[#allocation13 + $0x80] sm:$0xff] }
 0x4a0   :  { %1204 = vmatpush.msrb.mxu2 %v1169_v58 }
 0x4a1   :  { %1120 = vmatpush.msrb.mxu0 %v2847_v8  ;;  %1149 = vmatpush.msra.mxu1 %v2847_v8 }
 0x4a3   :  { %1121 = vmatpush.msrb.mxu0 %v2850_v38  ;;  %1150 = vmatpush.msra.mxu1 %v2850_v38 }
 0x4a4   :  { %1899 = vmatmul.msk.f32.vlgmr.msrb.gmra.mxu0 %vm559_vm2, %v2667_v61  ;;  %1903 = vmatmul.msk.f32.vlgmr.msra.gmra.mxu1 %vm559_vm2, %v2670_v62  ;;  %v1176_v61 = vld [vmem:[#allocation13 + $0xb8] sm:$0xff]  ;;  %v1175_v62 = vld [vmem:[#allocation13 + $0xb0] sm:$0xff] }
 0x4a5   :  { %1271 = vmatpush.msra.mxu0 %v1176_v61 }
 0x4a7   :  { %1272 = vmatpush.msra.mxu0 %v1175_v62 }
 0x4ac   :  { %1900 = vmatmul.msk.f32.gmra.mxu0 %vm559_vm2, %v2684_v3  ;;  %1904 = vmatmul.msk.f32.gmra.mxu1 %vm559_vm2, %v2681_v2  ;;  %v1174_v2 = vld [vmem:[#allocation13 + $0xa8] sm:$0xff]  ;;  %v1173_v3 = vld [vmem:[#allocation13 + $0xa0] sm:$0xff] }
 0x4ad   :  { %1273 = vmatpush.msra.mxu0 %v1174_v2 }
 0x4af   :  { %1274 = vmatpush.msra.mxu0 %v1173_v3 }
 0x4b4   :  { %1901 = vmatmul.msk.f32.gmra.mxu0 %vm559_vm2, %v2693_v11  ;;  %1905 = vmatmul.msk.f32.gmra.mxu1 %vm559_vm2, %v2696_v14 }
 0x4bc   :  { %1902 = vmatmul.msk.f32.gmra.mxu0 %vm559_vm2, %v2705_v18  ;;  %1906 = vmatmul.msk.f32.gmra.mxu1 %vm559_vm2, %v2708_v19 }
 0x4c4   :  { %1915 = vmatmul.msk.f32.vlgmr.msra.gmra.mxu0 %vm514_vm9, %v2714_v22 }
 0x4cc   :  { %1916 = vmatmul.msk.f32.gmra.mxu0 %vm514_vm9, %v2718_v24 }
 0x4d4   :  { %1917 = vmatmul.msk.f32.gmra.mxu0 %vm514_vm9, %v2722_v29 }
 0x4dc   :  { %1918 = vmatmul.msk.f32.gmra.mxu0 %vm514_vm9, %v2726_v32 }
 0x521   :  { %v1123_v11 = vpop.f32.mrf.mxu0  ;;  %v1152_v14 = vpop.f32.mrf.mxu1 }
 0x522   :  { %1907 = vmatmul.msk.f32.vlgmr.msrb.gmra.mxu2 %vm514_vm9, %v1152_v14  ;;  %1911 = vmatmul.msk.f32.vlgmr.msra.gmra.mxu3 %vm514_vm9, %v1123_v11 }
 0x529   :  { %v1126_v18 = vpop.f32.mrf.mxu0  ;;  %v1155_v19 = vpop.f32.mrf.mxu1 }
 0x52a   :  { %1908 = vmatmul.msk.f32.gmra.mxu2 %vm514_vm9, %v1155_v19  ;;  %1912 = vmatmul.msk.f32.gmra.mxu3 %vm514_vm9, %v1126_v18 }
 0x531   :  { %v1129_v22 = vpop.f32.mrf.mxu0  ;;  %v1158_v24 = vpop.f32.mrf.mxu1 }
 0x532   :  { %1909 = vmatmul.msk.f32.gmra.mxu2 %vm514_vm9, %v1158_v24  ;;  %1913 = vmatmul.msk.f32.gmra.mxu3 %vm514_vm9, %v1129_v22 }
 0x539   :  { %v1132_v29 = vpop.f32.mrf.mxu0  ;;  %v1161_v10 = vpop.f32.mrf.mxu1 }
 0x53a   :  { %1910 = vmatmul.msk.f32.gmra.mxu2 %vm514_vm9, %v1161_v10  ;;  %1914 = vmatmul.msk.f32.gmra.mxu3 %vm514_vm9, %v1132_v29 }
 0x541   :  { %v1276_v15 = vpop.f32.mrf.mxu0 }
 0x549   :  { %v1279_v33 = vpop.f32.mrf.mxu0 }
 0x551   :  { %v1282_v43 = vpop.f32.mrf.mxu0 }
 0x559   :  { %v1285_v50 = vpop.f32.mrf.mxu0 }
 0x5a5   :  { %v1206_v32 = vpop.f32.mrf.mxu2  ;;  %v1247_v16 = vpop.f32.mrf.mxu3 }
 0x5a6   :  { %v1248_v20 = vadd.f32 %v1247_v16, %v1206_v32 }
 0x5a8   :  { %v1288_v30 = vadd.f32 %v1276_v15, %v1248_v20 }
 0x5aa   :  { %v1297_v34 = vadd.f32 %v2062_v26, %v1288_v30 }
 0x5ac   :  { %1301 = vst.msk [vmem:[#allocation2] sm:$0xff] %vm514_vm9, %v1297_v34 }
 0x5ad   :  { %v1209_v35 = vpop.f32.mrf.mxu2  ;;  %v1250_v39 = vpop.f32.mrf.mxu3 }
 0x5ae   :  { %v1251_v23 = vadd.f32 %v1250_v39, %v1209_v35 }
 0x5b0   :  { %v1289_v36 = vadd.f32 %v1279_v33, %v1251_v23 }
 0x5b2   :  { %v1298_v40 = vadd.f32 %v2062_v26, %v1289_v36 }
 0x5b4   :  { %1302 = vst.msk [vmem:[#allocation2 + $0x8] sm:$0xff] %vm514_vm9, %v1298_v40 }
 0x5b5   :  { %v1212_v12 = vpop.f32.mrf.mxu2  ;;  %v1253_v46 = vpop.f32.mrf.mxu3 }
 0x5b6   :  { %v1254_v47 = vadd.f32 %v1253_v46, %v1212_v12 }
 0x5b8   :  { %v1290_v48 = vadd.f32 %v1282_v43, %v1254_v47 }
 0x5ba   :  { %v1299_v49 = vadd.f32 %v2062_v26, %v1290_v48 }
 0x5bc   :  { %1303 = vst.msk [vmem:[#allocation2 + $0x10] sm:$0xff] %vm514_vm9, %v1299_v49 }
 0x5bd   :  { %v1215_v51 = vpop.f32.mrf.mxu2  ;;  %v1256_v52 = vpop.f32.mrf.mxu3 }
 0x5be   :  { %v1257_v54 = vadd.f32 %v1256_v52, %v1215_v51 }
 0x5c0   :  { %v1291_v55 = vadd.f32 %v1285_v50, %v1257_v54 }
 0x5c2   :  { %v1300_v57 = vadd.f32 %v2062_v26, %v1291_v55 }
 0x5c4   :  { %1304 = vst.msk [vmem:[#allocation2 + $0x18] sm:$0xff] %vm514_vm9, %v1300_v57  ;;  %1317 = vmatpush.msrb.mxu1 %v1300_v57 }
 0x5c6   :  { %1318 = vmatpush.msrb.mxu1 %v1299_v49 }
 0x5c8   :  { %1319 = vmatpush.msrb.mxu1 %v1298_v40 }
 0x5ca   :  { %1320 = vmatpush.msrb.mxu1 %v1297_v34 }
 0x5cb   :  { %1920 = vmatmul.msk.f32.vlgmr.msrb.gmra.mxu1 %vm514_vm9, %v2753_v45 }
 0x5d3   :  { %1921 = vmatmul.msk.f32.gmra.mxu1 %vm514_vm9, %v2750_v44 }
 0x648   :  { %v1322_v60 = vpop.f32.mrf.mxu1 }
 0x649   :  { %v2900_v63 = vmul.f32 %v1322_v60, %v2790_v25 }
 0x650   :  { %v1325_v0 = vpop.f32.mrf.mxu1 }
 0x651   :  { %v2903_v1 = vmul.f32 %v1325_v0, %v2798_v37 }
 0x652 LB: > { %s1338_s7 = sld [smem:[#allocation9 + %s2388_s11]]  ;;  %s1339_s14 = scalar_lea.vmem [#allocation2], %s2388_s11  ;;  %s2388_s11 = sphi %s2386_s11, %s1335_s11   ;;  %v2384_v5 = vphi %v2382_v5, %v2383_v5   ;;  %v2380_v4 = vphi %v2378_v4, %v2379_v4  }
 0x653   : > { %v2063_v45 = vld [vmem:[%s1339_s14] ss:$0 sm:$0xff]  ;;  %s1335_s11 = sadd.s32 1, %s2388_s11  }
 0x654   : > { %v1345_v44 = vmax.f32 %v2384_v5, %v2063_v45  ;;  %v1346_v6 = vmax.f32 %v2380_v4, %v2063_v45  ;;  %p1332_p1 = scmp.ge.s32.totalorder %s1335_s11, 32  }
 0x655   :  { %v1399_v58 = vld [vmem:[#allocation15 + $0x1f8] sm:$0xff] (%p1332_p1)  ;;  %v1398_v62 = vld [vmem:[#allocation15 + $0x1f0] sm:$0xff] (%p1332_p1)  ;;  %v1397_v11 = vld [vmem:[#allocation15 + $0x1e8] sm:$0xff] (%p1332_p1)  ;;  %s3025_s4 = sld [smem:[#allocation36_spill]] (%p1332_p1)  ;;  %vm1585_vm8 = vcmask (%p1332_p1), 123904  }
 0x656   :  { %v1387_v59 = vld [vmem:[#allocation15 + $0x198] sm:$0xff] (%p1332_p1)  ;;  %v1386_v2 = vld [vmem:[#allocation15 + $0x190] sm:$0xff] (%p1332_p1)  ;;  %1426 = vmatpush.msra.mxu2 (%p1332_p1), %v1399_v58  ;;  %v1409_v13 = vld [vmem:[#allocation15 + $0x248] sm:$0xff] (%p1332_p1) }
 0x657   :  { %1334 = sbr.rel (!%p1332_p1) target bundleno = 1618 (0x652), region = 187  ;;  %v1411_v61 = vld [vmem:[#allocation15 + $0x258] sm:$0xff] (%p1332_p1)  ;;  %1451 = vmatpush.msrb.mxu3 (%p1332_p1), %v1387_v59  ;;  %v1410_v3 = vld [vmem:[#allocation15 + $0x250] sm:$0xff] (%p1332_p1)  ;;  %v1396_v21 = vld [vmem:[#allocation15 + $0x1e0] sm:$0xff] (%p1332_p1) }
 0x658   : > { %v1341_v7 = vstv %s1338_s7  ;;  %1474 = vmatpush.msrb.mxu0 (%p1332_p1), %v1411_v61  ;;  %1427 = vmatpush.msra.mxu2 (%p1332_p1), %v1398_v62  ;;  %v1384_v14 = vld [vmem:[#allocation15 + $0x180] sm:$0xff] (%p1332_p1)  ;;  %v1395_v19 = vld [vmem:[#allocation15 + $0x1d8] sm:$0xff] (%p1332_p1)  ;;  %v1394_v29 = vld [vmem:[#allocation15 + $0x1d0] sm:$0xff] (%p1332_p1) }
 0x659   : > { %vm1342_vm5 = vcmp.eq.s32.totalorder %v2739_v41, %v1341_v7  ;;  %vm1343_vm6 = vcmp.eq.s32.totalorder %v2742_v42, %v1341_v7  ;;  %v1385_v42 = vld [vmem:[#allocation15 + $0x188] sm:$0xff] (%p1332_p1)  ;;  %1452 = vmatpush.msrb.mxu3 (%p1332_p1), %v1386_v2  ;;  %v1408_v18 = vld [vmem:[#allocation15 + $0x240] sm:$0xff] (%p1332_p1)  ;;  %v1383_v22 = vld [vmem:[#allocation15 + $0x178] sm:$0xff] (%p1332_p1) }
 0x65a   : > { %v1351_v25 = vsel %vm1342_vm5, %v1345_v44, %v2384_v5   ;;  %v1352_v37 = vsel %vm1343_vm6, %v1346_v6, %v2380_v4   ;;  %1475 = vmatpush.msrb.mxu0 (%p1332_p1), %v1410_v3  ;;  %1428 = vmatpush.msra.mxu2 (%p1332_p1), %v1397_v11  ;;  %v1407_v24 = vld [vmem:[#allocation15 + $0x238] sm:$0xff] (%p1332_p1)  ;;  %v1382_v10 = vld [vmem:[#allocation15 + $0x170] sm:$0xff] (%p1332_p1)  ;;  %v1393_v32 = vld [vmem:[#allocation15 + $0x1c8] sm:$0xff] (%p1332_p1) }
 0x65b   : > { %v2379_v4 = vmov %v1352_v37   ;;  %v2383_v5 = vmov %v1351_v25   ;;  %v1353_v28 = vsel (%p1332_p1), %vm877_vm0, %v1351_v25, 0.0  ;;  %v1354_v9 = vsel (%p1332_p1), %vm878_vm1, %v1352_v37, 0.0  ;;  %1453 = vmatpush.msrb.mxu3 (%p1332_p1), %v1385_v42  ;;  %v1406_v15 = vld [vmem:[#allocation15 + $0x230] sm:$0xff] (%p1332_p1)  ;;  %v1381_v16 = vld [vmem:[#allocation15 + $0x168] sm:$0xff] (%p1332_p1)  ;;  %v1392_v26 = vld [vmem:[#allocation15 + $0x1c0] sm:$0xff] (%p1332_p1) }
 0x65c   :  { %1357 = vrot.lane.b32.xlu0 %v1353_v28, %s2416_s25  ;;  %1359 = vrot.lane.b32.xlu1 %v1354_v9, %s2416_s25  ;;  %v1405_v20 = vld [vmem:[#allocation15 + $0x228] sm:$0xff]  ;;  %v1380_v30 = vld [vmem:[#allocation15 + $0x160] sm:$0xff]  ;;  %v1391_v34 = vld [vmem:[#allocation15 + $0x1b8] sm:$0xff] }
 0x65d   :  { %1476 = vmatpush.msrb.mxu0 %v1409_v13  ;;  %1429 = vmatpush.msra.mxu2 %v1396_v21  ;;  %v1404_v33 = vld [vmem:[#allocation15 + $0x220] sm:$0xff]  ;;  %v1379_v35 = vld [vmem:[#allocation15 + $0x158] sm:$0xff]  ;;  %v1390_v23 = vld [vmem:[#allocation15 + $0x1b0] sm:$0xff] }
 0x65e   :  { %1454 = vmatpush.msrb.mxu3 %v1384_v14  ;;  %v1403_v39 = vld [vmem:[#allocation15 + $0x218] sm:$0xff]  ;;  %v1378_v36 = vld [vmem:[#allocation15 + $0x150] sm:$0xff]  ;;  %v1389_v43 = vld [vmem:[#allocation15 + $0x1a8] sm:$0xff] }
 0x65f   :  { %1477 = vmatpush.msrb.mxu0 %v1408_v18  ;;  %1430 = vmatpush.msra.mxu2 %v1395_v19  ;;  %v1402_v40 = vld [vmem:[#allocation15 + $0x210] sm:$0xff]  ;;  %v1377_v12 = vld [vmem:[#allocation15 + $0x148] sm:$0xff]  ;;  %v1388_v47 = vld [vmem:[#allocation15 + $0x1a0] sm:$0xff] }
 0x660   :  { %1455 = vmatpush.msrb.mxu3 %v1383_v22  ;;  %v1401_v46 = vld [vmem:[#allocation15 + $0x208] sm:$0xff]  ;;  %v1376_v48 = vld [vmem:[#allocation15 + $0x140] sm:$0xff]  ;;  %v1415_v50 = vld [vmem:[#allocation15 + $0x278] sm:$0xff] }
 0x661   :  { %1478 = vmatpush.msrb.mxu0 %v1407_v24  ;;  %1431 = vmatpush.msra.mxu2 %v1394_v29  ;;  %v1400_v49 = vld [vmem:[#allocation15 + $0x200] sm:$0xff]  ;;  %v1414_v51 = vld [vmem:[#allocation15 + $0x270] sm:$0xff]  ;;  %v1413_v52 = vld [vmem:[#allocation15 + $0x268] sm:$0xff] }
 0x662   :  { %1456 = vmatpush.msrb.mxu3 %v1382_v10  ;;  %1515 = vmatpush.msra.mxu1 %v1415_v50  ;;  %v1412_v54 = vld [vmem:[#allocation15 + $0x260] sm:$0xff]  ;;  %v1540_v6 = vld [vmem:[#allocation16 + $0x30] sm:$0xff]  ;;  %v1539_v7 = vld [vmem:[#allocation16 + $0x28] sm:$0xff]  ;;  %v2390_v50 = vmov 3e+38  }
 0x663   :  { %1479 = vmatpush.msrb.mxu0 %v1406_v15  ;;  %1432 = vmatpush.msra.mxu2 %v1393_v32  ;;  %v1538_v25 = vld [vmem:[#allocation16 + $0x20] sm:$0xff] }
 0x664   :  { %1365 = vrot.lane.b32.xlu0 %v1322_v60, %s2417_s26  ;;  %1367 = vrot.lane.b32.xlu1 %v1325_v0, %s2417_s26  ;;  %v2064_v2 = vld [vmem:[%s3003_s13 + $0x1] ss:$0 sm:$0xff]  ;;  %v2066_v15 = vld [vmem:[%s3025_s4] ss:$0 sm:$0xff] }
 0x665   :  { %1457 = vmatpush.msrb.mxu3 %v1381_v16  ;;  %1480 = vmatpush.msrb.mxu0 %v1405_v20  ;;  %vm1582_vm7 = vcmp.eq.s32.totalorder %v2739_v41, %v2066_v15  ;;  %v2065_v32 = vld [vmem:[%s3005_s15 + $0x1] ss:$0 sm:$0xff]  ;;  %s2398_s15 = smov 0  }
 0x666   :  { %1433 = vmatpush.msra.mxu2 %v1392_v26  ;;  %1516 = vmatpush.msra.mxu1 %v1414_v51  ;;  %v2394_v51 = vmov -3e+38  }
 0x667   :  { %1458 = vmatpush.msrb.mxu3 %v1380_v30  ;;  %1481 = vmatpush.msrb.mxu0 %v1404_v33 }
 0x668   :  { %1434 = vmatpush.msra.mxu2 %v1391_v34  ;;  %1517 = vmatpush.msra.mxu1 %v1413_v52 }
 0x669   :  { %1459 = vmatpush.msrb.mxu3 %v1379_v35  ;;  %1482 = vmatpush.msrb.mxu0 %v1403_v39 }
 0x66a   :  { %1435 = vmatpush.msra.mxu2 %v1390_v23  ;;  %1518 = vmatpush.msra.mxu1 %v1412_v54 }
 0x66b   :  { %1460 = vmatpush.msrb.mxu3 %v1378_v36  ;;  %1483 = vmatpush.msrb.mxu0 %v1402_v40 }
 0x66c   :  { %1436 = vmatpush.msra.mxu2 %v1389_v43  ;;  %1928 = vmatmul.msk.f32.vlgmr.msra.gmra.mxu1 %vm514_vm9, %v2850_v38 }
 0x66d   :  { %1461 = vmatpush.msrb.mxu3 %v1377_v12  ;;  %1484 = vmatpush.msrb.mxu0 %v1401_v46 }
 0x66e   :  { %1437 = vmatpush.msra.mxu2 %v1388_v47 }
 0x66f   :  { %1462 = vmatpush.msrb.mxu3 %v1376_v48  ;;  %1485 = vmatpush.msrb.mxu0 %v1400_v49 }
 0x674   :  { %1929 = vmatmul.msk.f32.gmra.mxu1 %vm514_vm9, %v2847_v8 }
 0x6ce   :  { %v1358_v55 = vpop.permute.xlu0 %1357  ;;  %v1360_v57 = vpop.permute.xlu1 %1359 }
 0x6cf   :  { %v1371_v60 = vsel %vm514_vm9, %v2900_v63, %v1358_v55  ;;  %v1372_v5 = vsel %vm514_vm9, %v2903_v1, %v1360_v57  ;;  %v1541_v63 = vld [vmem:[#allocation16 + $0x38] sm:$0xff] }
 0x6d0   :  { %1565 = vmatpush.msrb.mxu2 %v1541_v63 }
 0x6d2   :  { %1566 = vmatpush.msrb.mxu2 %v1540_v6 }
 0x6d4   :  { %1567 = vmatpush.msrb.mxu2 %v1539_v7 }
 0x6d6   :  { %v1366_v0 = vpop.permute.xlu0 %1365  ;;  %v1368_v45 = vpop.permute.xlu1 %1367  ;;  %1568 = vmatpush.msrb.mxu2 %v1538_v25 }
 0x6d7   :  { %v1373_v4 = vsel %vm903_vm3, %v1371_v60, %v1366_v0  ;;  %v1374_v44 = vsel %vm903_vm3, %v1372_v5, %v1368_v45 }
 0x6d8   :  { %1922 = vmatmul.msk.f32.vlgmr.msra.gmra.mxu2 %vm946_vm4, %v1373_v4  ;;  %1924 = vmatmul.msk.f32.vlgmr.msrb.gmra.mxu3 %vm946_vm4, %v1373_v4 }
 0x6d9   :  { %1926 = vmatmul.msk.f32.vlgmr.msrb.gmra.mxu0 %vm946_vm4, %v1373_v4 }
 0x6e0   :  { %1923 = vmatmul.msk.f32.gmra.mxu2 %vm946_vm4, %v1374_v44  ;;  %1925 = vmatmul.msk.f32.gmra.mxu3 %vm946_vm4, %v1374_v44 }
 0x6e1   :  { %1927 = vmatmul.msk.f32.gmra.mxu0 %vm946_vm4, %v1374_v44 }
 0x6e9   :  { %v1520_v58 = vpop.f32.mrf.mxu1 }
 0x6f1   :  { %v1523_v22 = vpop.f32.mrf.mxu1 }
 0x756   :  { %v1487_v37 = vpop.f32.mrf.mxu0 }
 0x757   :  { %v1493_v59 = vmul.f32 %v1487_v37, %v2784_v56 }
 0x75b   :  { %v1439_v28 = vpop.f32.mrf.mxu2  ;;  %v1464_v1 = vpop.f32.mrf.mxu3 }
 0x75c   :  { %v1445_v9 = vmul.f32 %v1439_v28, %v2779_v31 }
 0x75e   :  { %v1465_v61 = vadd.f32 %v1464_v1, %v1445_v9  ;;  %v1490_v11 = vpop.f32.mrf.mxu0 }
 0x75f   :  { %v1494_v18 = vmul.f32 %v1490_v11, %v2782_v53 }
 0x760   :  { %v1495_v62 = vadd.f32 %v1493_v59, %v1465_v61 }
 0x762   :  { %v1526_v3 = vadd.f32 %v1520_v58, %v1495_v62 }
 0x763   :  { %v1442_v42 = vpop.f32.mrf.mxu2  ;;  %v1467_v14 = vpop.f32.mrf.mxu3 }
 0x764   :  { %v1533_v13 = vadd.f32 %v2064_v2, %v1526_v3  ;;  %v1446_v21 = vmul.f32 %v1442_v42, %v2776_v27  ;;  %v1934_v27 = vsel %vm1582_vm7, 1.0, %v2415_v17 }
 0x765   :  { %v1586_v53 = vsel %vm1585_vm8, %v1934_v27, 0.0 }
 0x766   :  { %v1535_v19 = vmax.f32 %v1533_v13, 0.0  ;;  %v1468_v31 = vadd.f32 %v1467_v14, %v1446_v21  ;;  %1587 = vadd.xlane.f32.xlu2 %v1586_v53 }
 0x768   :  { %1932 = vmatmul.msk.f32.vlgmr.msrb.gmra.mxu2 %vm514_vm9, %v1535_v19  ;;  %v1496_v56 = vadd.f32 %v1494_v18, %v1468_v31 }
 0x76a   :  { %v1527_v24 = vadd.f32 %v1523_v22, %v1496_v56 }
 0x76c   :  { %v1534_v29 = vadd.f32 %v2064_v2, %v1527_v24 }
 0x76e   :  { %v1536_v10 = vmax.f32 %v1534_v29, 0.0 }
 0x770   :  { %1933 = vmatmul.msk.f32.gmra.mxu2 %vm514_vm9, %v1536_v10 }
 0x7d9   :  { %v1588_v17 = vpop.xlane.xlu2 %1587 }
 0x7da   :  { %v1612_v35 = vmax.f32 %v1588_v17, 1.0 }
 0x7dc   :  { %2067 = vrcp.f32 %v1612_v35  ;;  %vm1618_vm10 = vweird.f32 %v1612_v35  ;;  %v1622_v12 = vand.u32 2147483647, %v1612_v35 }
 0x7de   :  { %vm1623_vm13 = vcmp.eq.f32.partialorder %v1622_v12, 8.507059e+37 }
 0x7e2   :  { %v2068_v39 = vpop.eup %2067 }
 0x7e3   :  { %v1614_v23 = vmul.f32 %v2068_v39, %v1612_v35  ;;  %vm1619_vm11 = vweird.f32 %v2068_v39 }
 0x7e4   :  { %vm1620_vm12 = vmor %vm1618_vm10, %vm1619_vm11 }
 0x7e5   :  { %v1615_v36 = vsub.f32 1.0, %v1614_v23 }
 0x7e7   :  { %v1616_v40 = vmul.f32 %v2068_v39, %v1615_v36 }
 0x7e9   :  { %v1617_v43 = vadd.f32 %v2068_v39, %v1616_v40 }
 0x7eb   :  { %v1570_v16 = vpop.f32.mrf.mxu2  ;;  %v1621_v46 = vsel %vm1620_vm12, %v2068_v39, %v1617_v43 }
 0x7ec   :  { %v1571_v20 = vadd.f32 %v2065_v32, %v1570_v16 }
 0x7ee   :  { %v1576_v26 = vadd.f32 %v1571_v20, %v2850_v38  ;;  %v1624_v38 = vand.u32 2147483648, %v1612_v35 }
 0x7f0   :  { %1578 = vst.msk [vmem:[#allocation19] sm:$0xff] %vm514_vm9, %v1576_v26 }
 0x7f3   :  { %v1573_v30 = vpop.f32.mrf.mxu2 }
 0x7f4   :  { %v1574_v33 = vadd.f32 %v2065_v32, %v1573_v30 }
 0x7f6   :  { %v1577_v34 = vadd.f32 %v1574_v33, %v2847_v8  ;;  %v1625_v8 = vor.u32 1.1754944e-38, %v1624_v38 }
 0x7f8   :  { %1579 = vst.msk [vmem:[#allocation19 + $0x8] sm:$0xff] %vm514_vm9, %v1577_v34  ;;  %1606 = vmatpush.msra.mxu3 %v1577_v34  ;;  %v1626_v48 = vsel %vm1623_vm13, %v1625_v8, %v1621_v46 }
 0x7fa   :  { %1607 = vmatpush.msra.mxu3 %v1576_v26 }
 0x7fb   :  { %1935 = vmatmul.msk.f32.vlgmr.msra.gmra.mxu3 %vm559_vm2, %v1934_v27 }
 0x87e   :  { %v1609_v47 = vpop.f32.mrf.mxu3 }
 0x87f   :  { %v2953_v49 = vmul.f32 %v1626_v48, %v1609_v47 }
 0x880 LB: > { %s1636_s12 = sld [smem:[#allocation10 + %s2400_s15]]  ;;  %s1637_s16 = scalar_lea.vmem [#allocation19], %s2400_s15  ;;  %s2400_s15 = sphi %s2398_s15, %s1633_s15   ;;  %v2396_v51 = vphi %v2394_v51, %v2395_v51   ;;  %v2392_v50 = vphi %v2390_v50, %v2391_v50  }
 0x881   : > { %v2069_v52 = vld [vmem:[%s1637_s16] ss:$0 sm:$0xff]  ;;  %s1633_s15 = sadd.s32 1, %s2400_s15  }
 0x882   : > { %v1642_v54 = vmax.f32 %v2396_v51, %v2069_v52  ;;  %v1646_v55 = vmin.f32 %v2392_v50, %v2069_v52  ;;  %p1630_p2 = scmp.ge.s32.totalorder %s1633_s15, 16  }
 0x883   :  { %1654 = vrot.lane.b32.xlu0 (%p1630_p2), %v1609_v47, %s2416_s25  ;;  %vm1648_vm14 = vcmp.gt.f32.partialorder (%p1630_p2), %v1588_v17, 0.0  ;;  %v1688_v4 = vld [vmem:[#allocation18 + $0x78] sm:$0xff] (%p1630_p2)  ;;  %v1687_v5 = vld [vmem:[#allocation18 + $0x70] sm:$0xff] (%p1630_p2)  ;;  %s2418_s24 = smov (%p1630_p2), 96   ;;  %v1686_v44 = vld [vmem:[#allocation18 + $0x68] sm:$0xff] (%p1630_p2)  ;;  %s1758_s14 = sshll.u32 (%p1630_p2), %s3010_s20, 4  ;;  %s1759_s14 = int_to_ptr.hbm [resolvable:$true] %s1758_s14 }
 0x884   :  { %1693 = vmatpush.msrb.mxu1 (%p1630_p2), %v1688_v4  ;;  %v1685_v63 = vld [vmem:[#allocation18 + $0x60] sm:$0xff] (%p1630_p2)  ;;  %v1684_v7 = vld [vmem:[#allocation18 + $0x58] sm:$0xff] (%p1630_p2)  ;;  %v1683_v25 = vld [vmem:[#allocation18 + $0x50] sm:$0xff] (%p1630_p2)  ;;  %s2419_s22 = smov (%p1630_p2), [#allocation19]   ;;  %s1772_s20 = sshll.u32 (%p1630_p2), %s3011_s21, 4  ;;  %s1773_s20 = int_to_ptr.hbm [resolvable:$true] %s1772_s20 }
 0x885   :  { %1632 = sbr.rel (!%p1630_p2) target bundleno = 2176 (0x880), region = 198  ;;  %v1681_v37 = vld [vmem:[#allocation18 + $0x40] sm:$0xff] (%p1630_p2)  ;;  %v1680_v28 = vld [vmem:[#allocation18 + $0x38] sm:$0xff] (%p1630_p2)  ;;  %v1679_v1 = vld [vmem:[#allocation18 + $0x30] sm:$0xff] (%p1630_p2)  ;;  %s1756_s9 = sshll.u32 (%p1630_p2), %s2419_s22, 4  ;;  %s1757_s9 = int_to_ptr.vmem [resolvable:$true] %s1756_s9 }
 0x886   : > { %v1639_v57 = vstv %s1636_s12  ;;  %1694 = vmatpush.msrb.mxu1 (%p1630_p2), %v1687_v5  ;;  %v1678_v9 = vld [vmem:[#allocation18 + $0x28] sm:$0xff] (%p1630_p2)  ;;  %v1677_v58 = vld [vmem:[#allocation18 + $0x20] sm:$0xff] (%p1630_p2)  ;;  %v1676_v59 = vld [vmem:[#allocation18 + $0x18] sm:$0xff] (%p1630_p2) }
 0x887   : > { %vm1640_vm2 = vcmp.eq.s32.totalorder %v2739_v41, %v1639_v57  ;;  %v1682_v41 = vld [vmem:[#allocation18 + $0x48] sm:$0xff] (%p1630_p2)  ;;  %v1675_v61 = vld [vmem:[#allocation18 + $0x10] sm:$0xff] (%p1630_p2)  ;;  %v1673_v2 = vld [vmem:[#allocation18] sm:$0xff] (%p1630_p2)  ;;  %1764 = dma.vmem_to_hbm [thread:$0]  (%p1630_p2), %s1757_s9, 256, %s1759_s14, [#allocation5], %s2403_s30, %s2403_s30, %s2404_s5  }
 0x888   : > { %v1645_v60 = vsel %vm1640_vm2, %v1642_v54, %v2396_v51   ;;  %v1647_v0 = vsel %vm1640_vm2, %v1646_v55, %v2392_v50   ;;  %1695 = vmatpush.msrb.mxu1 (%p1630_p2), %v1686_v44  ;;  %v1674_v62 = vld [vmem:[#allocation18 + $0x8] sm:$0xff] (%p1630_p2)  ;;  %v1717_v3 = vld [vmem:[%s3008_s18 + $0x18] sm:$0xff] (%p1630_p2)  ;;  %v1716_v31 = vld [vmem:[%s3008_s18 + $0x10] sm:$0xff] (%p1630_p2) }
 0x889   : > { %v2391_v50 = vmov %v1647_v0   ;;  %v2395_v51 = vmov %v1645_v60   ;;  %v1652_v45 = vsel (%p1630_p2), %vm1648_vm14, %v1647_v0, 0.0  ;;  %v1651_v6 = vsel (%p1630_p2), %vm1648_vm14, %v1645_v60, 0.0  ;;  %1737 = vmatpush.msrb.mxu3 (%p1630_p2), %v1717_v3  ;;  %v1715_v22 = vld [vmem:[%s3008_s18 + $0x8] sm:$0xff] (%p1630_p2)  ;;  %v1714_v56 = vld [vmem:[%s3008_s18] sm:$0xff] (%p1630_p2) }
 0x88a   :  { %1662 = vrot.lane.b32.xlu1 %v1652_v45, %s2418_s24  ;;  %1696 = vmatpush.msrb.mxu1 %v1685_v63  ;;  %v2070_v24 = vld [vmem:[%s3007_s17] ss:$0 sm:$0xff]  ;;  %s2420_s17 = smov [#allocation20]  }
 0x88b   :  { %1658 = vrot.lane.b32.xlu0 %v1651_v6, %s2417_s26  ;;  %1738 = vmatpush.msrb.mxu3 %v1716_v31  ;;  %v2071_v27 = vld [vmem:[%s3009_s19] ss:$0 sm:$0xff]  ;;  %s1770_s1 = sshll.u32 %s2420_s17, 4  ;;  %s1771_s1 = int_to_ptr.vmem [resolvable:$true] %s1770_s1 }
 0x88c   :  { %1697 = vmatpush.msrb.mxu1 %v1684_v7 }
 0x88d   :  { %1739 = vmatpush.msrb.mxu3 %v1715_v22 }
 0x88e   :  { %1698 = vmatpush.msrb.mxu1 %v1683_v25 }
 0x88f   :  { %1740 = vmatpush.msrb.mxu3 %v1714_v56 }
 0x890   :  { %1699 = vmatpush.msrb.mxu1 %v1682_v41 }
 0x892   :  { %1700 = vmatpush.msrb.mxu1 %v1681_v37 }
 0x894   :  { %1701 = vmatpush.msrb.mxu1 %v1680_v28 }
 0x896   :  { %1702 = vmatpush.msrb.mxu1 %v1679_v1 }
 0x898   :  { %1703 = vmatpush.msrb.mxu1 %v1678_v9 }
 0x89a   :  { %1704 = vmatpush.msrb.mxu1 %v1677_v58 }
 0x89c   :  { %1705 = vmatpush.msrb.mxu1 %v1676_v59 }
 0x89e   :  { %1706 = vmatpush.msrb.mxu1 %v1675_v61 }
 0x8a0   :  { %1707 = vmatpush.msrb.mxu1 %v1674_v62 }
 0x8a2   :  { %1708 = vmatpush.msrb.mxu1 %v1673_v2 }
 0x8f5   :  { %v1655_v11 = vpop.permute.xlu0 %1654 }
 0x8f6   :  { %v1665_v13 = vsel %vm514_vm9, %v2953_v49, %v1655_v11 }
 0x8fc   :  { %v1663_v42 = vpop.permute.xlu1 %1662 }
 0x8fd   :  { %v1659_v21 = vpop.permute.xlu0 %1658 }
 0x8fe   :  { %v1666_v14 = vsel %vm903_vm3, %v1665_v13, %v1659_v21 }
 0x8ff   :  { %v1667_v18 = vsel %vm946_vm4, %v1666_v14, %v1663_v42  ;;  %vm1750_vm4 = vcmask 58368  }
 0x900   :  { %v1669_v19 = vand.u32 2147483647, %v1667_v18  ;;  %vm1668_vm15 = vcmp.ne.f32.partialorder %v1667_v18, %v1667_v18 }
 0x902   :  { %vm1670_vm0 = vcmp.eq.f32.partialorder %v1669_v19, inf }
 0x903   :  { %vm1671_vm1 = vmor %vm1668_vm15, %vm1670_vm0 }
 0x904   :  { %vm1936_vm5 = vmneg %vm1671_vm1 }
 0x905   :  { %1937 = vmatmul.msk.f32.vlgmr.msrb.gmra.mxu1 %vm1936_vm5, %v1667_v18 }
 0x982   :  { %v1710_v29 = vpop.f32.mrf.mxu1 }
 0x983   :  { %v1711_v10 = vadd.f32 %v2070_v24, %v1710_v29 }
 0x985   :  { %v1713_v15 = vmax.f32 %v1711_v10, 0.0 }
 0x987   :  { %1938 = vmatmul.msk.f32.vlgmr.msrb.gmra.mxu3 %vm514_vm9, %v1713_v15 }
 0xa0a   :  { %v1742_v53 = vpop.f32.mrf.mxu3 }
 0xa0b   :  { %v1743_v32 = vadd.f32 %v2071_v27, %v1742_v53 }
 0xa0d   :  { %v1746_v16 = vand.u32 2147483647, %v1743_v32  ;;  %vm1745_vm9 = vcmp.ne.f32.partialorder %v1743_v32, %v1743_v32 }
 0xa0f   :  { %vm1747_vm3 = vcmp.eq.f32.partialorder %v1746_v16, inf }
 0xa10   :  { %vm1748_vm6 = vmor %vm1745_vm9, %vm1747_vm3 }
 0xa11   :  { %v1749_v20 = vsel %vm1748_vm6, 0.0, %v1743_v32 }
 0xa12   :  { %1751 = vst.msk [vmem:[#allocation20] sm:$0x3] %vm1750_vm4, %v1749_v20 }
 0xa13   :  { %1775 = dma.vmem_to_hbm [thread:$0]  %s1771_s1, 32, %s1773_s20, [#allocation21]  }
 0xa14   :  { %2362 = dma.done.wait [#allocation5], 256  }
 0xa15   :  { %2363 = vsyncadd [#allocation5], 4294967040 }
 0xa16   :  { %2364 = dma.done.wait [#allocation21], 32  }
 0xa17   :  { %2365 = vsyncadd [#allocation21], 4294967264 }
 0xa18   :  { %1784 = vsyncpa [#allocation4], 1 }
 0xa19   :  { %1785 = vsyncpa [#allocation8], 1 }
 0xa1a   :  { %1786 = vsyncpa [#allocation14], 1 }
 0xa1b   :  { %1787 = vsyncpa [#allocation17], 1 }
 0xa1c   :  { %1788 = vsyncpa [#allocation5], 1 }
 0xa1d   :  { %1789 = vsyncpa [#allocation21], 1 }
 0xa1e   :  { %1790 = vsyncpa [#allocation6], 1 }
 0xa1f   :  { %1791 = vsyncpa [#allocation11], 1 }

</bundles_post_ra>
